<compile_context>
chip_gen: v7x
topology: tpu7x:2x2x1
jax: 0.10.0
libtpu: 0.0.40
codegen_flags: <defaults>
</compile_context>

<pallas_src>
import functools

import jax
import jax.numpy as jnp
import numpy as np
from jax.experimental import pallas as pl
from jax.experimental.pallas import tpu as pltpu

LANE = 128


def _round_up(x, m):
    return ((x + m - 1) // m) * m


# ----------------------------------------------------------------------------
# Pallas kernel: one grid step = (one batch tile, one TemporalBlock layer).
# ----------------------------------------------------------------------------
def _tcn_kernel(ds_ref, x_ref, w1_ref, b1_ref, w2_ref, b2_ref, wd_ref, bd_ref,
                o_ref, pad_ref, *, kernel_size, dilations, has_downsample,
                in_widths, mid_widths, seq_len, bt, cp, c_last_pad, pad_rows):
    del ds_ref  # only consumed by the WD/BD index maps (scalar prefetch)
    K = kernel_size
    L = seq_len
    nl = len(dilations)
    M = bt * L
    layer = pl.program_id(1)

    def causal_conv_relu(w_ref_l, b_ref_l, dil, cw):
        """One causal dilated conv (+ bias, ReLU) read straight off pad_ref."""
        if cw == cp and K * cp <= 256:
            # Fused im2col: one K*cp-deep contraction fills the 256-deep MXU
            # on v6e/v7x; the (M, K*cp) bf16 transient is tiny at this depth.
            cols = [pad_ref[:, pad_rows - (K - 1 - k) * dil:
                               pad_rows - (K - 1 - k) * dil + L, :]
                    for k in range(K)]
            col = jnp.concatenate(cols, axis=-1).reshape(M, K * cp)
            y = jnp.dot(col, w_ref_l[0], preferred_element_type=jnp.float32)
        else:
            # K accumulated matmuls over the dilated slices: no im2col
            # materialization, identical MXU FLOPs.
            y = None
            for k in range(K):
                start = pad_rows - (K - 1 - k) * dil
                xk = pad_ref[:, start:start + L, :cw].reshape(M, cw)
                wk = w_ref_l[0, k * cp:k * cp + cw, :]
                part = jnp.dot(xk, wk, preferred_element_type=jnp.float32)
                y = part if y is None else y + part
        return jnp.maximum(y + b_ref_l[0], 0.0)

    # One @pl.when branch per layer: dilation / channel widths / downsample
    # flag are static inside each branch (static slice offsets), while the
    # layer grid axis still streams this layer's weights into VMEM.
    for li in range(nl):

        @pl.when(layer == li)
        def _(li=li):
            dil = dilations[li]
            cw_in = in_widths[li]     # padded in-channel width of this layer
            cw_mid = mid_widths[li]   # padded out-channel width (= conv2 in)

            if li == 0:
                # Stage the network input and zero the causal-pad rows once
                # per batch tile; the pad rows are never overwritten after.
                if pad_rows > 0:
                    pad_ref[:, 0:pad_rows, :] = jnp.zeros(
                        (bt, pad_rows, cp), jnp.bfloat16)
                pad_ref[:, pad_rows:pad_rows + L, :cw_in] = x_ref[...]
                if cw_in < cp:
                    pad_ref[:, pad_rows:pad_rows + L, cw_in:] = jnp.zeros(
                        (bt, L, cp - cw_in), jnp.bfloat16)

            # Residual first, before pad_ref is overwritten with h1.
            a_flat = pad_ref[:, pad_rows:pad_rows + L, :].reshape(M, cp)
            if has_downsample[li]:
                res = jnp.dot(a_flat[:, :cw_in], wd_ref[0, :cw_in, :],
                              preferred_element_type=jnp.float32) + bd_ref[0]
            else:
                res = a_flat.astype(jnp.float32)

            # conv1 -> ReLU    (dropout1: identity, eval semantics)
            h1 = causal_conv_relu(w1_ref, b1_ref, dil, cw_in)
            pad_ref[:, pad_rows:pad_rows + L, :] = (
                h1.astype(jnp.bfloat16).reshape(bt, L, cp))

            # conv2 -> ReLU    (dropout2: identity, eval semantics)
            h2 = causal_conv_relu(w2_ref, b2_ref, dil, cw_mid)

            out = jnp.maximum(h2 + res, 0.0)                    # (M, cp) f32

            if li < nl - 1:
                # Next layer's input stays resident in VMEM.
                pad_ref[:, pad_rows:pad_rows + L, :] = (
                    out.astype(jnp.bfloat16).reshape(bt, L, cp))
            else:
                # Final layer: write only the live output lanes back to HBM.
                o_ref[...] = out.reshape(bt, L, cp)[:, :, :c_last_pad]


# ----------------------------------------------------------------------------
# Wrapper: PyTorch NCL layout in/out, channel padding, (batch, layer) grid.
# ----------------------------------------------------------------------------
def tcn_forward(x_ncl, prep, kernel_size):
    """x (N, C_in, L) -> (N, C_last, L)."""
    K = kernel_size
    W1, B1, W2, B2 = prep["W1"], prep["B1"], prep["W2"], prep["B2"]
    WD, BD, ds_map = prep["WD"], prep["BD"], prep["ds_map"]
    cp, cin0_pad = prep["cp"], prep["cin0_pad"]
    c_last, c_last_pad = prep["c_last"], prep["c_last_pad"]
    dilations = prep["dilations"]
    nl = len(dilations)

    N, c_in, L = x_ncl.shape
    pmax = (K - 1) * max(dilations)
    pad_rows = _round_up(pmax, 8) if pmax > 0 else 0  # sublane-aligned pad rows

    # NCL -> NLC, pad input channels to the 128-lane boundary, bf16 MXU
    # operand.  (XLA fuses transpose+pad+cast into a single HBM pass; an NLC
    # model boundary would remove even that.)
    x_nlc = jnp.transpose(x_ncl, (0, 2, 1))
    x_p = jnp.pad(x_nlc, ((0, 0), (0, 0), (0, cin0_pad - c_in))
                  ).astype(jnp.bfloat16)

    bt = 1                          # batch tile per grid step ('parallel' axis)
    grid = (N // bt, nl)

    kernel = functools.partial(
        _tcn_kernel, kernel_size=K, dilations=dilations,
        has_downsample=prep["has_downsample"], in_widths=prep["in_widths"],
        mid_widths=prep["mid_widths"], seq_len=L, bt=bt, cp=cp,
        c_last_pad=c_last_pad, pad_rows=pad_rows)

    # Advisory cost estimate for XLA's scheduler.
    flops = 0
    for li in range(nl):
        flops += 2 * N * L * (K * prep["in_widths"][li]) * cp       # conv1
        flops += 2 * N * L * (K * prep["mid_widths"][li]) * cp      # conv2
        if prep["has_downsample"][li]:
            flops += 2 * N * L * prep["in_widths"][li] * cp         # 1x1 res
    bytes_accessed = int(
        x_p.size * 2
        + (N // bt) * (W1.size * 2 + W2.size * 2 + WD.size * 2
                       + (B1.size + B2.size + BD.size) * 4)
        + N * L * c_last_pad * 4)

    # Explicit per-step VMEM budget (weight blocks are double-buffered by the
    # pipeline; pad scratch is persistent; generous transient headroom).
    blk_bytes = (2 * (K * cp * cp) * 2      # W1 + W2 blocks, bf16
                 + (cp * cp) * 2            # WD block, bf16
                 + 3 * cp * 4)              # B1 + B2 + BD blocks, f32
    vmem_est = (2 * blk_bytes                       # double-buffered weights
                + 2 * bt * L * cin0_pad * 2         # x block (x2 buffers)
                + 2 * bt * L * c_last_pad * 4       # out block (x2 buffers)
                + bt * (pad_rows + L) * cp * 2      # persistent pad scratch
                + 8 * bt * L * cp * 4)              # f32/bf16 transients
    vmem_limit = int(min(max(2 * vmem_est, 32 * 2**20), 64 * 2**20))

    grid_spec = pltpu.PrefetchScalarGridSpec(
        num_scalar_prefetch=1,            # ds_map: layer -> downsample block
        grid=grid,
        in_specs=[
            pl.BlockSpec((bt, L, cin0_pad), lambda b, l, ds: (b, 0, 0)),
            pl.BlockSpec((1, K * cp, cp), lambda b, l, ds: (l, 0, 0)),
            pl.BlockSpec((1, 1, cp), lambda b, l, ds: (l, 0, 0)),
            pl.BlockSpec((1, K * cp, cp), lambda b, l, ds: (l, 0, 0)),
            pl.BlockSpec((1, 1, cp), lambda b, l, ds: (l, 0, 0)),
            pl.BlockSpec((1, cp, cp), lambda b, l, ds: (ds[l], 0, 0)),
            pl.BlockSpec((1, 1, cp), lambda b, l, ds: (ds[l], 0, 0)),
        ],
        out_specs=pl.BlockSpec((bt, L, c_last_pad), lambda b, l, ds: (b, 0, 0)),
        scratch_shapes=[pltpu.VMEM((bt, pad_rows + L, cp), jnp.bfloat16)],
    )

    out = pl.pallas_call(
        kernel,
        out_shape=jax.ShapeDtypeStruct((N, L, c_last_pad), jnp.float32),
        grid_spec=grid_spec,
        compiler_params=pltpu.CompilerParams(
            dimension_semantics=("parallel", "arbitrary"),
            vmem_limit_bytes=vmem_limit),
        cost_estimate=pl.CostEstimate(flops=flops, transcendentals=0,
                                      bytes_accessed=bytes_accessed),
    )(ds_map, x_p, W1, B1, W2, B2, WD, BD)

    # Drop channel padding; back to PyTorch NCL layout.
    return jnp.transpose(out[:, :, :c_last], (0, 2, 1))


# ----------------------------------------------------------------------------
# Parameter init (weight_norm folded) + packing for the kernel.
# ----------------------------------------------------------------------------
def _init_conv_weightnorm(key, c_in, c_out, ksize):
    kv, kg, kb = jax.random.split(key, 3)
    fan_in = c_in * ksize
    bound = 1.0 / np.sqrt(fan_in)
    v = jax.random.uniform(kv, (c_out, c_in, ksize), jnp.float32, -bound, bound)
    g = jax.random.uniform(kg, (c_out,), jnp.float32, 0.5, 1.5)
    norm = jnp.sqrt(jnp.sum(v * v, axis=(1, 2), keepdims=True))
    w = g[:, None, None] * v / norm            # (c_out, c_in, K), PyTorch layout
    b = jax.random.uniform(kb, (c_out,), jnp.float32, -bound, bound)
    return w, b


def init_tcn_params(key, num_inputs, num_channels, kernel_size):
    """Per-layer effective (weight-norm-folded) params in PyTorch layout."""
    params = []
    for i, c_out in enumerate(num_channels):
        c_in = num_inputs if i == 0 else num_channels[i - 1]
        key, k1, k2, kd = jax.random.split(key, 4)
        w1, b1 = _init_conv_weightnorm(k1, c_in, c_out, kernel_size)
        w2, b2 = _init_conv_weightnorm(k2, c_out, c_out, kernel_size)
        if c_in != c_out:
            kdw, kdb = jax.random.split(kd)
            bound = 1.0 / np.sqrt(c_in)
            wd = jax.random.uniform(kdw, (c_out, c_in), jnp.float32, -bound, bound)
            bd = jax.random.uniform(kdb, (c_out,), jnp.float32, -bound, bound)
        else:
            wd, bd = None, None                # identity residual
        params.append((w1, b1, w2, b2, wd, bd))
    return params


def prepare_params(layer_params, num_inputs, num_channels, kernel_size):
    """Pad channels to 128 lanes, pack conv weights as (K*cp, cp) row blocks
    (tap k at rows [k*cp, k*cp+c_in)), pack downsample weights compactly for
    downsample layers only, stack per layer, cast matmul operands to bf16."""
    K = kernel_size
    nl = len(num_channels)
    cs = [num_inputs] + list(num_channels)
    cp = _round_up(max(cs), LANE)
    cin0_pad = _round_up(num_inputs, LANE)

    W1 = np.zeros((nl, K * cp, cp), np.float32)
    B1 = np.zeros((nl, 1, cp), np.float32)
    W2 = np.zeros((nl, K * cp, cp), np.float32)
    B2 = np.zeros((nl, 1, cp), np.float32)

    wd_blocks, bd_blocks, ds_map = [], [], []
    for i, (w1, b1, w2, b2, wd, bd) in enumerate(layer_params):
        c_in, c_out = cs[i], cs[i + 1]

        blk = np.zeros((K, cp, cp), np.float32)
        blk[:, :c_in, :c_out] = np.transpose(np.asarray(w1), (2, 1, 0))
        W1[i] = blk.reshape(K * cp, cp)
        B1[i, 0, :c_out] = np.asarray(b1)

        blk = np.zeros((K, cp, cp), np.float32)
        blk[:, :c_out, :c_out] = np.transpose(np.asarray(w2), (2, 1, 0))
        W2[i] = blk.reshape(K * cp, cp)
        B2[i, 0, :c_out] = np.asarray(b2)

        if wd is not None:
            wdp = np.zeros((cp, cp), np.float32)
            wdp[:c_in, :c_out] = np.asarray(wd).T
            bdp = np.zeros((1, cp), np.float32)
            bdp[0, :c_out] = np.asarray(bd)
            ds_map.append(len(wd_blocks))
            wd_blocks.append(wdp)
            bd_blocks.append(bdp)
        else:
            # Dummy (unused) block index for identity-residual layers.
            ds_map.append(max(len(wd_blocks) - 1, 0))

    if not wd_blocks:   # no downsample anywhere: keep a single dummy block
        wd_blocks.append(np.zeros((cp, cp), np.float32))
        bd_blocks.append(np.zeros((1, cp), np.float32))

    return {
        "W1": jnp.asarray(W1, jnp.bfloat16), "B1": jnp.asarray(B1),
        "W2": jnp.asarray(W2, jnp.bfloat16), "B2": jnp.asarray(B2),
        "WD": jnp.asarray(np.stack(wd_blocks), jnp.bfloat16),
        "BD": jnp.asarray(np.stack(bd_blocks)),
        "ds_map": jnp.asarray(np.array(ds_map, np.int32)),
        "cp": cp, "cin0_pad": cin0_pad,
        "c_last": num_channels[-1],
        "c_last_pad": _round_up(num_channels[-1], LANE),
        "in_widths": tuple(_round_up(cs[i], LANE) for i in range(nl)),
        "mid_widths": tuple(_round_up(cs[i + 1], LANE) for i in range(nl)),
        "dilations": tuple(2 ** i for i in range(nl)),
        "has_downsample": tuple(cs[i] != cs[i + 1] for i in range(nl)),
    }


# ----------------------------------------------------------------------------
# Pure-JAX references for validation.
# ----------------------------------------------------------------------------
def ref_tcn_f32(x_ncl, layer_params, kernel_size):
    """Exact TemporalConvNet forward semantics, all in f32."""
    h = x_ncl
    for i, (w1, b1, w2, b2, wd, bd) in enumerate(layer_params):
        d = 2 ** i
        P = (kernel_size - 1) * d

        def conv(inp, w, b):
            y = jax.lax.conv_general_dilated(
                inp, w, window_strides=(1,), padding=[(P, 0)],
                rhs_dilation=(d,), dimension_numbers=("NCH", "OIH", "NCH"))
            return y + b.reshape(1, -1, 1)

        a = jax.nn.relu(conv(h, w1, b1))
        out = jax.nn.relu(conv(a, w2, b2))
        if wd is None:
            res = h
        else:
            res = jnp.einsum("ncl,oc->nol", h, wd) + bd.reshape(1, -1, 1)
        h = jax.nn.relu(out + res)
    return h


def ref_tcn_bf16(x_ncl, layer_params, kernel_size):
    """Reference mirroring the kernel's precision choices exactly:
    bf16 matmul operands, f32 accumulation, bf16 inter-stage activations."""
    h = x_ncl.astype(jnp.bfloat16)
    out = None
    for i, (w1, b1, w2, b2, wd, bd) in enumerate(layer_params):
        d = 2 ** i
        P = (kernel_size - 1) * d

        def conv_relu(inp_bf, w, b):
            y = jax.lax.conv_general_dilated(
                inp_bf, w.astype(jnp.bfloat16), window_strides=(1,),
                padding=[(P, 0)], rhs_dilation=(d,),
                dimension_numbers=("NCH", "OIH", "NCH"),
                preferred_element_type=jnp.float32)
            return jnp.maximum(y + b.reshape(1, -1, 1), 0.0)

        h1 = conv_relu(h, w1, b1)
        h2 = conv_relu(h1.astype(jnp.bfloat16), w2, b2)
        if wd is None:
            res = h.astype(jnp.float32)
        else:
            res = jnp.einsum("ncl,oc->nol", h, wd.astype(jnp.bfloat16),
                             preferred_element_type=jnp.float32) + bd.reshape(1, -1, 1)
        out = jnp.maximum(h2 + res, 0.0)
        h = out.astype(jnp.bfloat16)
    return out


if __name__ == "__main__":
    key = jax.random.PRNGKey(0)
    kernel_size = 2

    configs = [
        # (N, num_inputs, L, num_channels) -- small, module-consistent shapes.
        (2, 4, 16, (8, 16, 16)),      # cp=128: fused 256-deep im2col conv path
        (2, 4, 16, (160, 160, 24)),   # cp=256: split-tap convs, narrow layer-0
                                      # contraction, trimmed (128-lane) output
    ]

    for N, num_inputs, L, num_channels in configs:
        key, kx, kp = jax.random.split(key, 3)
        x = jax.random.normal(kx, (N, num_inputs, L), jnp.float32)
        layer_params = init_tcn_params(kp, num_inputs, num_channels, kernel_size)
        prep = prepare_params(layer_params, num_inputs, num_channels, kernel_size)

        fwd = jax.jit(lambda xx, prep=prep: tcn_forward(xx, prep, kernel_size))
        y = jax.block_until_ready(fwd(x))
        assert y.shape == (N, num_channels[-1], L), y.shape

        # Tight check vs. a reference with identical precision choices
        # (bf16 MXU operands, f32 accumulation, bf16 inter-layer activations).
        y_bf16 = ref_tcn_bf16(x, layer_params, kernel_size)
        np.testing.assert_allclose(np.asarray(y), np.asarray(y_bf16),
                                   atol=2e-3, rtol=2e-3)

        # Loose sanity check vs. exact f32 module semantics (bf16 rounding).
        y_f32 = ref_tcn_f32(x, layer_params, kernel_size)
        np.testing.assert_allclose(np.asarray(y), np.asarray(y_f32),
                                   atol=2e-1, rtol=2e-1)

    print("KERNEL_OK")
</pallas_src>

<mosaic_0001>
module attributes {stable_mosaic.version = 11 : i64} {
  func.func @_tcn_kernel(%arg0: i32, %arg1: i32, %arg2: memref<3xi32, #tpu.memory_space<smem>>, %arg3: memref<1x16x128xbf16, #tpu.memory_space<vmem>>, %arg4: memref<1x256x128xbf16, #tpu.memory_space<vmem>>, %arg5: memref<1x1x128xf32, #tpu.memory_space<vmem>>, %arg6: memref<1x256x128xbf16, #tpu.memory_space<vmem>>, %arg7: memref<1x1x128xf32, #tpu.memory_space<vmem>>, %arg8: memref<1x128x128xbf16, #tpu.memory_space<vmem>>, %arg9: memref<1x1x128xf32, #tpu.memory_space<vmem>>, %arg10: memref<1x16x128xf32, #tpu.memory_space<vmem>>, %arg11: memref<1x24x128xbf16, #tpu.memory_space<vmem>>) attributes {dimension_semantics = [#tpu.dimension_semantics<parallel>, #tpu.dimension_semantics<arbitrary>], iteration_bounds = array<i64: 2, 3>, scalar_prefetch = 1 : i64, scratch_operands = 1 : i64, tpu.core_type = #tpu.core_type<tc>, window_params = [{transform_indices = @transform_0, window_bounds = array<i64: 1, 16, 128>}, {transform_indices = @transform_1, window_bounds = array<i64: 1, 256, 128>}, {transform_indices = @transform_2, window_bounds = array<i64: 1, 1, 128>}, {transform_indices = @transform_3, window_bounds = array<i64: 1, 256, 128>}, {transform_indices = @transform_4, window_bounds = array<i64: 1, 1, 128>}, {transform_indices = @transform_5, window_bounds = array<i64: 1, 128, 128>}, {transform_indices = @transform_6, window_bounds = array<i64: 1, 1, 128>}, {transform_indices = @transform_7, window_bounds = array<i64: 1, 16, 128>}]} {
    %c0_i32 = arith.constant 0 : i32
    %0 = arith.cmpi eq, %arg1, %c0_i32 : i32
    %1 = arith.extui %0 : i1 to i32
    %c0_i32_0 = arith.constant 0 : i32
    %2 = arith.cmpi ne, %1, %c0_i32_0 : i32
    scf.if %2 {
      %cst = arith.constant 0.000000e+00 : bf16
      %9 = vector.broadcast %cst : bf16 to vector<1x8x128xbf16>
      %c0 = arith.constant 0 : index
      %c0_3 = arith.constant 0 : index
      %c0_4 = arith.constant 0 : index
      %10 = vector.load %arg11[%c0, %c0_3, %c0_4] : memref<1x24x128xbf16, #tpu.memory_space<vmem>>, vector<1x8x128xbf16>
      tpu.vector_store %arg11[%c0, %c0_3, %c0_4], %9 {strides = array<i32>} : memref<1x24x128xbf16, #tpu.memory_space<vmem>>, vector<1x8x128xbf16>,
      %c0_5 = arith.constant 0 : index
      %c0_6 = arith.constant 0 : index
      %c0_7 = arith.constant 0 : index
      %11 = vector.load %arg3[%c0_5, %c0_6, %c0_7] : memref<1x16x128xbf16, #tpu.memory_space<vmem>>, vector<1x16x128xbf16>
      %c0_8 = arith.constant 0 : index
      %c8 = arith.constant 8 : index
      %c0_9 = arith.constant 0 : index
      %12 = vector.load %arg11[%c0_8, %c8, %c0_9] : memref<1x24x128xbf16, #tpu.memory_space<vmem>>, vector<1x16x128xbf16>
      tpu.vector_store %arg11[%c0_8, %c8, %c0_9], %11 {strides = array<i32>} : memref<1x24x128xbf16, #tpu.memory_space<vmem>>, vector<1x16x128xbf16>,
      %c0_10 = arith.constant 0 : index
      %c8_11 = arith.constant 8 : index
      %c0_12 = arith.constant 0 : index
      %13 = vector.load %arg11[%c0_10, %c8_11, %c0_12] : memref<1x24x128xbf16, #tpu.memory_space<vmem>>, vector<1x16x128xbf16>
      %14 = vector.shape_cast %13 : vector<1x16x128xbf16> to vector<16x128xbf16>
      %c0_13 = arith.constant 0 : index
      %c0_14 = arith.constant 0 : index
      %c0_15 = arith.constant 0 : index
      %15 = vector.load %arg8[%c0_13, %c0_14, %c0_15] : memref<1x128x128xbf16, #tpu.memory_space<vmem>>, vector<1x128x128xbf16>
      %16 = vector.shape_cast %15 : vector<1x128x128xbf16> to vector<128x128xbf16>
      %cst_16 = arith.constant dense<0.000000e+00> : vector<16x128xf32>
      %17 = tpu.matmul %14, %16, %cst_16 {dimension_numbers = #tpu.dot_dimension_numbers<[1], [0], [0], [1], [0, 0, 1, 1], [], []>} : vector<16x128xbf16>, vector<128x128xbf16>, vector<16x128xf32> -> vector<16x128xf32>
      %c0_17 = arith.constant 0 : index
      %c0_18 = arith.constant 0 : index
      %c0_19 = arith.constant 0 : index
      %18 = vector.load %arg9[%c0_17, %c0_18, %c0_19] : memref<1x1x128xf32, #tpu.memory_space<vmem>>, vector<1x1x128xf32>
      %19 = vector.shape_cast %18 : vector<1x1x128xf32> to vector<1x128xf32>
      %20 = vector.broadcast %19 : vector<1x128xf32> to vector<16x128xf32>
      %21 = arith.addf %17, %20 : vector<16x128xf32>
      %c0_20 = arith.constant 0 : index
      %c7 = arith.constant 7 : index
      %c0_21 = arith.constant 0 : index
      %22 = vector.load %arg11[%c0_20, %c7, %c0_21] : memref<1x24x128xbf16, #tpu.memory_space<vmem>>, vector<1x16x128xbf16>
      %c0_22 = arith.constant 0 : index
      %c8_23 = arith.constant 8 : index
      %c0_24 = arith.constant 0 : index
      %23 = vector.load %arg11[%c0_22, %c8_23, %c0_24] : memref<1x24x128xbf16, #tpu.memory_space<vmem>>, vector<1x16x128xbf16>
      %24 = tpu.concatenate %22, %23 in 2 : vector<1x16x128xbf16>, vector<1x16x128xbf16> -> vector<1x16x256xbf16>
      %25 = vector.shape_cast %24 : vector<1x16x256xbf16> to vector<16x256xbf16>
      %c0_25 = arith.constant 0 : index
      %c0_26 = arith.constant 0 : index
      %c0_27 = arith.constant 0 : index
      %26 = vector.load %arg4[%c0_25, %c0_26, %c0_27] : memref<1x256x128xbf16, #tpu.memory_space<vmem>>, vector<1x256x128xbf16>
      %27 = vector.shape_cast %26 : vector<1x256x128xbf16> to vector<256x128xbf16>
      %cst_28 = arith.constant dense<0.000000e+00> : vector<16x128xf32>
      %28 = tpu.matmul %25, %27, %cst_28 {dimension_numbers = #tpu.dot_dimension_numbers<[1], [0], [0], [1], [0, 0, 1, 1], [], []>} : vector<16x256xbf16>, vector<256x128xbf16>, vector<16x128xf32> -> vector<16x128xf32>
      %c0_29 = arith.constant 0 : index
      %c0_30 = arith.constant 0 : index
      %c0_31 = arith.constant 0 : index
      %29 = vector.load %arg5[%c0_29, %c0_30, %c0_31] : memref<1x1x128xf32, #tpu.memory_space<vmem>>, vector<1x1x128xf32>
      %30 = vector.shape_cast %29 : vector<1x1x128xf32> to vector<1x128xf32>
      %31 = vector.broadcast %30 : vector<1x128xf32> to vector<16x128xf32>
      %32 = arith.addf %28, %31 : vector<16x128xf32>
      %cst_32 = arith.constant 0.000000e+00 : f32
      %33 = vector.broadcast %cst_32 : f32 to vector<16x128xf32>
      %34 = arith.maximumf %32, %33 : vector<16x128xf32>
      %35 = arith.truncf %34 : vector<16x128xf32> to vector<16x128xbf16>
      %36 = vector.shape_cast %35 : vector<16x128xbf16> to vector<1x16x128xbf16>
      %c0_33 = arith.constant 0 : index
      %c8_34 = arith.constant 8 : index
      %c0_35 = arith.constant 0 : index
      %37 = vector.load %arg11[%c0_33, %c8_34, %c0_35] : memref<1x24x128xbf16, #tpu.memory_space<vmem>>, vector<1x16x128xbf16>
      tpu.vector_store %arg11[%c0_33, %c8_34, %c0_35], %36 {strides = array<i32>} : memref<1x24x128xbf16, #tpu.memory_space<vmem>>, vector<1x16x128xbf16>,
      %c0_36 = arith.constant 0 : index
      %c7_37 = arith.constant 7 : index
      %c0_38 = arith.constant 0 : index
      %38 = vector.load %arg11[%c0_36, %c7_37, %c0_38] : memref<1x24x128xbf16, #tpu.memory_space<vmem>>, vector<1x16x128xbf16>
      %c0_39 = arith.constant 0 : index
      %c8_40 = arith.constant 8 : index
      %c0_41 = arith.constant 0 : index
      %39 = vector.load %arg11[%c0_39, %c8_40, %c0_41] : memref<1x24x128xbf16, #tpu.memory_space<vmem>>, vector<1x16x128xbf16>
      %40 = tpu.concatenate %38, %39 in 2 : vector<1x16x128xbf16>, vector<1x16x128xbf16> -> vector<1x16x256xbf16>
      %41 = vector.shape_cast %40 : vector<1x16x256xbf16> to vector<16x256xbf16>
      %c0_42 = arith.constant 0 : index
      %c0_43 = arith.constant 0 : index
      %c0_44 = arith.constant 0 : index
      %42 = vector.load %arg6[%c0_42, %c0_43, %c0_44] : memref<1x256x128xbf16, #tpu.memory_space<vmem>>, vector<1x256x128xbf16>
      %43 = vector.shape_cast %42 : vector<1x256x128xbf16> to vector<256x128xbf16>
      %cst_45 = arith.constant dense<0.000000e+00> : vector<16x128xf32>
      %44 = tpu.matmul %41, %43, %cst_45 {dimension_numbers = #tpu.dot_dimension_numbers<[1], [0], [0], [1], [0, 0, 1, 1], [], []>} : vector<16x256xbf16>, vector<256x128xbf16>, vector<16x128xf32> -> vector<16x128xf32>
      %c0_46 = arith.constant 0 : index
      %c0_47 = arith.constant 0 : index
      %c0_48 = arith.constant 0 : index
      %45 = vector.load %arg7[%c0_46, %c0_47, %c0_48] : memref<1x1x128xf32, #tpu.memory_space<vmem>>, vector<1x1x128xf32>
      %46 = vector.shape_cast %45 : vector<1x1x128xf32> to vector<1x128xf32>
      %47 = vector.broadcast %46 : vector<1x128xf32> to vector<16x128xf32>
      %48 = arith.addf %44, %47 : vector<16x128xf32>
      %cst_49 = arith.constant 0.000000e+00 : f32
      %49 = vector.broadcast %cst_49 : f32 to vector<16x128xf32>
      %50 = arith.maximumf %48, %49 : vector<16x128xf32>
      %51 = arith.addf %50, %21 : vector<16x128xf32>
      %cst_50 = arith.constant 0.000000e+00 : f32
      %52 = vector.broadcast %cst_50 : f32 to vector<16x128xf32>
      %53 = arith.maximumf %51, %52 : vector<16x128xf32>
      %54 = arith.truncf %53 : vector<16x128xf32> to vector<16x128xbf16>
      %55 = vector.shape_cast %54 : vector<16x128xbf16> to vector<1x16x128xbf16>
      %c0_51 = arith.constant 0 : index
      %c8_52 = arith.constant 8 : index
      %c0_53 = arith.constant 0 : index
      %56 = vector.load %arg11[%c0_51, %c8_52, %c0_53] : memref<1x24x128xbf16, #tpu.memory_space<vmem>>, vector<1x16x128xbf16>
      tpu.vector_store %arg11[%c0_51, %c8_52, %c0_53], %55 {strides = array<i32>} : memref<1x24x128xbf16, #tpu.memory_space<vmem>>, vector<1x16x128xbf16>,
    } else {
    }
    %c1_i32 = arith.constant 1 : i32
    %3 = arith.cmpi eq, %arg1, %c1_i32 : i32
    %4 = arith.extui %3 : i1 to i32
    %c0_i32_1 = arith.constant 0 : i32
    %5 = arith.cmpi ne, %4, %c0_i32_1 : i32
    scf.if %5 {
      %c0 = arith.constant 0 : index
      %c8 = arith.constant 8 : index
      %c0_3 = arith.constant 0 : index
      %9 = vector.load %arg11[%c0, %c8, %c0_3] : memref<1x24x128xbf16, #tpu.memory_space<vmem>>, vector<1x16x128xbf16>
      %10 = vector.shape_cast %9 : vector<1x16x128xbf16> to vector<16x128xbf16>
      %c0_4 = arith.constant 0 : index
      %c0_5 = arith.constant 0 : index
      %c0_6 = arith.constant 0 : index
      %11 = vector.load %arg8[%c0_4, %c0_5, %c0_6] : memref<1x128x128xbf16, #tpu.memory_space<vmem>>, vector<1x128x128xbf16>
      %12 = vector.shape_cast %11 : vector<1x128x128xbf16> to vector<128x128xbf16>
      %cst = arith.constant dense<0.000000e+00> : vector<16x128xf32>
      %13 = tpu.matmul %10, %12, %cst {dimension_numbers = #tpu.dot_dimension_numbers<[1], [0], [0], [1], [0, 0, 1, 1], [], []>} : vector<16x128xbf16>, vector<128x128xbf16>, vector<16x128xf32> -> vector<16x128xf32>
      %c0_7 = arith.constant 0 : index
      %c0_8 = arith.constant 0 : index
      %c0_9 = arith.constant 0 : index
      %14 = vector.load %arg9[%c0_7, %c0_8, %c0_9] : memref<1x1x128xf32, #tpu.memory_space<vmem>>, vector<1x1x128xf32>
      %15 = vector.shape_cast %14 : vector<1x1x128xf32> to vector<1x128xf32>
      %16 = vector.broadcast %15 : vector<1x128xf32> to vector<16x128xf32>
      %17 = arith.addf %13, %16 : vector<16x128xf32>
      %c0_10 = arith.constant 0 : index
      %c6 = arith.constant 6 : index
      %c0_11 = arith.constant 0 : index
      %18 = vector.load %arg11[%c0_10, %c6, %c0_11] : memref<1x24x128xbf16, #tpu.memory_space<vmem>>, vector<1x16x128xbf16>
      %c0_12 = arith.constant 0 : index
      %c8_13 = arith.constant 8 : index
      %c0_14 = arith.constant 0 : index
      %19 = vector.load %arg11[%c0_12, %c8_13, %c0_14] : memref<1x24x128xbf16, #tpu.memory_space<vmem>>, vector<1x16x128xbf16>
      %20 = tpu.concatenate %18, %19 in 2 : vector<1x16x128xbf16>, vector<1x16x128xbf16> -> vector<1x16x256xbf16>
      %21 = vector.shape_cast %20 : vector<1x16x256xbf16> to vector<16x256xbf16>
      %c0_15 = arith.constant 0 : index
      %c0_16 = arith.constant 0 : index
      %c0_17 = arith.constant 0 : index
      %22 = vector.load %arg4[%c0_15, %c0_16, %c0_17] : memref<1x256x128xbf16, #tpu.memory_space<vmem>>, vector<1x256x128xbf16>
      %23 = vector.shape_cast %22 : vector<1x256x128xbf16> to vector<256x128xbf16>
      %cst_18 = arith.constant dense<0.000000e+00> : vector<16x128xf32>
      %24 = tpu.matmul %21, %23, %cst_18 {dimension_numbers = #tpu.dot_dimension_numbers<[1], [0], [0], [1], [0, 0, 1, 1], [], []>} : vector<16x256xbf16>, vector<256x128xbf16>, vector<16x128xf32> -> vector<16x128xf32>
      %c0_19 = arith.constant 0 : index
      %c0_20 = arith.constant 0 : index
      %c0_21 = arith.constant 0 : index
      %25 = vector.load %arg5[%c0_19, %c0_20, %c0_21] : memref<1x1x128xf32, #tpu.memory_space<vmem>>, vector<1x1x128xf32>
      %26 = vector.shape_cast %25 : vector<1x1x128xf32> to vector<1x128xf32>
      %27 = vector.broadcast %26 : vector<1x128xf32> to vector<16x128xf32>
      %28 = arith.addf %24, %27 : vector<16x128xf32>
      %cst_22 = arith.constant 0.000000e+00 : f32
      %29 = vector.broadcast %cst_22 : f32 to vector<16x128xf32>
      %30 = arith.maximumf %28, %29 : vector<16x128xf32>
      %31 = arith.truncf %30 : vector<16x128xf32> to vector<16x128xbf16>
      %32 = vector.shape_cast %31 : vector<16x128xbf16> to vector<1x16x128xbf16>
      %c0_23 = arith.constant 0 : index
      %c8_24 = arith.constant 8 : index
      %c0_25 = arith.constant 0 : index
      %33 = vector.load %arg11[%c0_23, %c8_24, %c0_25] : memref<1x24x128xbf16, #tpu.memory_space<vmem>>, vector<1x16x128xbf16>
      tpu.vector_store %arg11[%c0_23, %c8_24, %c0_25], %32 {strides = array<i32>} : memref<1x24x128xbf16, #tpu.memory_space<vmem>>, vector<1x16x128xbf16>,
      %c0_26 = arith.constant 0 : index
      %c6_27 = arith.constant 6 : index
      %c0_28 = arith.constant 0 : index
      %34 = vector.load %arg11[%c0_26, %c6_27, %c0_28] : memref<1x24x128xbf16, #tpu.memory_space<vmem>>, vector<1x16x128xbf16>
      %c0_29 = arith.constant 0 : index
      %c8_30 = arith.constant 8 : index
      %c0_31 = arith.constant 0 : index
      %35 = vector.load %arg11[%c0_29, %c8_30, %c0_31] : memref<1x24x128xbf16, #tpu.memory_space<vmem>>, vector<1x16x128xbf16>
      %36 = tpu.concatenate %34, %35 in 2 : vector<1x16x128xbf16>, vector<1x16x128xbf16> -> vector<1x16x256xbf16>
      %37 = vector.shape_cast %36 : vector<1x16x256xbf16> to vector<16x256xbf16>
      %c0_32 = arith.constant 0 : index
      %c0_33 = arith.constant 0 : index
      %c0_34 = arith.constant 0 : index
      %38 = vector.load %arg6[%c0_32, %c0_33, %c0_34] : memref<1x256x128xbf16, #tpu.memory_space<vmem>>, vector<1x256x128xbf16>
      %39 = vector.shape_cast %38 : vector<1x256x128xbf16> to vector<256x128xbf16>
      %cst_35 = arith.constant dense<0.000000e+00> : vector<16x128xf32>
      %40 = tpu.matmul %37, %39, %cst_35 {dimension_numbers = #tpu.dot_dimension_numbers<[1], [0], [0], [1], [0, 0, 1, 1], [], []>} : vector<16x256xbf16>, vector<256x128xbf16>, vector<16x128xf32> -> vector<16x128xf32>
      %c0_36 = arith.constant 0 : index
      %c0_37 = arith.constant 0 : index
      %c0_38 = arith.constant 0 : index
      %41 = vector.load %arg7[%c0_36, %c0_37, %c0_38] : memref<1x1x128xf32, #tpu.memory_space<vmem>>, vector<1x1x128xf32>
      %42 = vector.shape_cast %41 : vector<1x1x128xf32> to vector<1x128xf32>
      %43 = vector.broadcast %42 : vector<1x128xf32> to vector<16x128xf32>
      %44 = arith.addf %40, %43 : vector<16x128xf32>
      %cst_39 = arith.constant 0.000000e+00 : f32
      %45 = vector.broadcast %cst_39 : f32 to vector<16x128xf32>
      %46 = arith.maximumf %44, %45 : vector<16x128xf32>
      %47 = arith.addf %46, %17 : vector<16x128xf32>
      %cst_40 = arith.constant 0.000000e+00 : f32
      %48 = vector.broadcast %cst_40 : f32 to vector<16x128xf32>
      %49 = arith.maximumf %47, %48 : vector<16x128xf32>
      %50 = arith.truncf %49 : vector<16x128xf32> to vector<16x128xbf16>
      %51 = vector.shape_cast %50 : vector<16x128xbf16> to vector<1x16x128xbf16>
      %c0_41 = arith.constant 0 : index
      %c8_42 = arith.constant 8 : index
      %c0_43 = arith.constant 0 : index
      %52 = vector.load %arg11[%c0_41, %c8_42, %c0_43] : memref<1x24x128xbf16, #tpu.memory_space<vmem>>, vector<1x16x128xbf16>
      tpu.vector_store %arg11[%c0_41, %c8_42, %c0_43], %51 {strides = array<i32>} : memref<1x24x128xbf16, #tpu.memory_space<vmem>>, vector<1x16x128xbf16>,
    } else {
    }
    %c2_i32 = arith.constant 2 : i32
    %6 = arith.cmpi eq, %arg1, %c2_i32 : i32
    %7 = arith.extui %6 : i1 to i32
    %c0_i32_2 = arith.constant 0 : i32
    %8 = arith.cmpi ne, %7, %c0_i32_2 : i32
    scf.if %8 {
      %c0 = arith.constant 0 : index
      %c8 = arith.constant 8 : index
      %c0_3 = arith.constant 0 : index
      %9 = vector.load %arg11[%c0, %c8, %c0_3] : memref<1x24x128xbf16, #tpu.memory_space<vmem>>, vector<1x16x128xbf16>
      %10 = vector.shape_cast %9 : vector<1x16x128xbf16> to vector<16x128xbf16>
      %11 = arith.extf %10 : vector<16x128xbf16> to vector<16x128xf32>
      %c0_4 = arith.constant 0 : index
      %c4 = arith.constant 4 : index
      %c0_5 = arith.constant 0 : index
      %12 = vector.load %arg11[%c0_4, %c4, %c0_5] : memref<1x24x128xbf16, #tpu.memory_space<vmem>>, vector<1x16x128xbf16>
      %c0_6 = arith.constant 0 : index
      %c8_7 = arith.constant 8 : index
      %c0_8 = arith.constant 0 : index
      %13 = vector.load %arg11[%c0_6, %c8_7, %c0_8] : memref<1x24x128xbf16, #tpu.memory_space<vmem>>, vector<1x16x128xbf16>
      %14 = tpu.concatenate %12, %13 in 2 : vector<1x16x128xbf16>, vector<1x16x128xbf16> -> vector<1x16x256xbf16>
      %15 = vector.shape_cast %14 : vector<1x16x256xbf16> to vector<16x256xbf16>
      %c0_9 = arith.constant 0 : index
      %c0_10 = arith.constant 0 : index
      %c0_11 = arith.constant 0 : index
      %16 = vector.load %arg4[%c0_9, %c0_10, %c0_11] : memref<1x256x128xbf16, #tpu.memory_space<vmem>>, vector<1x256x128xbf16>
      %17 = vector.shape_cast %16 : vector<1x256x128xbf16> to vector<256x128xbf16>
      %cst = arith.constant dense<0.000000e+00> : vector<16x128xf32>
      %18 = tpu.matmul %15, %17, %cst {dimension_numbers = #tpu.dot_dimension_numbers<[1], [0], [0], [1], [0, 0, 1, 1], [], []>} : vector<16x256xbf16>, vector<256x128xbf16>, vector<16x128xf32> -> vector<16x128xf32>
      %c0_12 = arith.constant 0 : index
      %c0_13 = arith.constant 0 : index
      %c0_14 = arith.constant 0 : index
      %19 = vector.load %arg5[%c0_12, %c0_13, %c0_14] : memref<1x1x128xf32, #tpu.memory_space<vmem>>, vector<1x1x128xf32>
      %20 = vector.shape_cast %19 : vector<1x1x128xf32> to vector<1x128xf32>
      %21 = vector.broadcast %20 : vector<1x128xf32> to vector<16x128xf32>
      %22 = arith.addf %18, %21 : vector<16x128xf32>
      %cst_15 = arith.constant 0.000000e+00 : f32
      %23 = vector.broadcast %cst_15 : f32 to vector<16x128xf32>
      %24 = arith.maximumf %22, %23 : vector<16x128xf32>
      %25 = arith.truncf %24 : vector<16x128xf32> to vector<16x128xbf16>
      %26 = vector.shape_cast %25 : vector<16x128xbf16> to vector<1x16x128xbf16>
      %c0_16 = arith.constant 0 : index
      %c8_17 = arith.constant 8 : index
      %c0_18 = arith.constant 0 : index
      %27 = vector.load %arg11[%c0_16, %c8_17, %c0_18] : memref<1x24x128xbf16, #tpu.memory_space<vmem>>, vector<1x16x128xbf16>
      tpu.vector_store %arg11[%c0_16, %c8_17, %c0_18], %26 {strides = array<i32>} : memref<1x24x128xbf16, #tpu.memory_space<vmem>>, vector<1x16x128xbf16>,
      %c0_19 = arith.constant 0 : index
      %c4_20 = arith.constant 4 : index
      %c0_21 = arith.constant 0 : index
      %28 = vector.load %arg11[%c0_19, %c4_20, %c0_21] : memref<1x24x128xbf16, #tpu.memory_space<vmem>>, vector<1x16x128xbf16>
      %c0_22 = arith.constant 0 : index
      %c8_23 = arith.constant 8 : index
      %c0_24 = arith.constant 0 : index
      %29 = vector.load %arg11[%c0_22, %c8_23, %c0_24] : memref<1x24x128xbf16, #tpu.memory_space<vmem>>, vector<1x16x128xbf16>
      %30 = tpu.concatenate %28, %29 in 2 : vector<1x16x128xbf16>, vector<1x16x128xbf16> -> vector<1x16x256xbf16>
      %31 = vector.shape_cast %30 : vector<1x16x256xbf16> to vector<16x256xbf16>
      %c0_25 = arith.constant 0 : index
      %c0_26 = arith.constant 0 : index
      %c0_27 = arith.constant 0 : index
      %32 = vector.load %arg6[%c0_25, %c0_26, %c0_27] : memref<1x256x128xbf16, #tpu.memory_space<vmem>>, vector<1x256x128xbf16>
      %33 = vector.shape_cast %32 : vector<1x256x128xbf16> to vector<256x128xbf16>
      %cst_28 = arith.constant dense<0.000000e+00> : vector<16x128xf32>
      %34 = tpu.matmul %31, %33, %cst_28 {dimension_numbers = #tpu.dot_dimension_numbers<[1], [0], [0], [1], [0, 0, 1, 1], [], []>} : vector<16x256xbf16>, vector<256x128xbf16>, vector<16x128xf32> -> vector<16x128xf32>
      %c0_29 = arith.constant 0 : index
      %c0_30 = arith.constant 0 : index
      %c0_31 = arith.constant 0 : index
      %35 = vector.load %arg7[%c0_29, %c0_30, %c0_31] : memref<1x1x128xf32, #tpu.memory_space<vmem>>, vector<1x1x128xf32>
      %36 = vector.shape_cast %35 : vector<1x1x128xf32> to vector<1x128xf32>
      %37 = vector.broadcast %36 : vector<1x128xf32> to vector<16x128xf32>
      %38 = arith.addf %34, %37 : vector<16x128xf32>
      %cst_32 = arith.constant 0.000000e+00 : f32
      %39 = vector.broadcast %cst_32 : f32 to vector<16x128xf32>
      %40 = arith.maximumf %38, %39 : vector<16x128xf32>
      %41 = arith.addf %40, %11 : vector<16x128xf32>
      %cst_33 = arith.constant 0.000000e+00 : f32
      %42 = vector.broadcast %cst_33 : f32 to vector<16x128xf32>
      %43 = arith.maximumf %41, %42 : vector<16x128xf32>
      %44 = vector.shape_cast %43 : vector<16x128xf32> to vector<1x16x128xf32>
      %c0_34 = arith.constant 0 : index
      %c0_35 = arith.constant 0 : index
      %c0_36 = arith.constant 0 : index
      %45 = vector.load %arg10[%c0_34, %c0_35, %c0_36] : memref<1x16x128xf32, #tpu.memory_space<vmem>>, vector<1x16x128xf32>
      tpu.vector_store %arg10[%c0_34, %c0_35, %c0_36], %44 {strides = array<i32>} : memref<1x16x128xf32, #tpu.memory_space<vmem>>, vector<1x16x128xf32>,
    } else {
    }
    return
  }
  func.func @transform_0(%arg0: i32, %arg1: i32, %arg2: memref<3xi32, #tpu.memory_space<smem>>) -> (i32, i32, i32) {
    %c0_i32 = arith.constant 0 : i32
    %c0_i32_0 = arith.constant 0 : i32
    %c0_i32_1 = arith.constant 0 : i32
    return %arg0, %c0_i32, %c0_i32_0 : i32, i32, i32
  }
  func.func @transform_1(%arg0: i32, %arg1: i32, %arg2: memref<3xi32, #tpu.memory_space<smem>>) -> (i32, i32, i32) {
    %c0_i32 = arith.constant 0 : i32
    %c0_i32_0 = arith.constant 0 : i32
    %c0_i32_1 = arith.constant 0 : i32
    return %arg1, %c0_i32, %c0_i32_0 : i32, i32, i32
  }
  func.func @transform_2(%arg0: i32, %arg1: i32, %arg2: memref<3xi32, #tpu.memory_space<smem>>) -> (i32, i32, i32) {
    %c0_i32 = arith.constant 0 : i32
    %c0_i32_0 = arith.constant 0 : i32
    %c0_i32_1 = arith.constant 0 : i32
    return %arg1, %c0_i32, %c0_i32_0 : i32, i32, i32
  }
  func.func @transform_3(%arg0: i32, %arg1: i32, %arg2: memref<3xi32, #tpu.memory_space<smem>>) -> (i32, i32, i32) {
    %c0_i32 = arith.constant 0 : i32
    %c0_i32_0 = arith.constant 0 : i32
    %c0_i32_1 = arith.constant 0 : i32
    return %arg1, %c0_i32, %c0_i32_0 : i32, i32, i32
  }
  func.func @transform_4(%arg0: i32, %arg1: i32, %arg2: memref<3xi32, #tpu.memory_space<smem>>) -> (i32, i32, i32) {
    %c0_i32 = arith.constant 0 : i32
    %c0_i32_0 = arith.constant 0 : i32
    %c0_i32_1 = arith.constant 0 : i32
    return %arg1, %c0_i32, %c0_i32_0 : i32, i32, i32
  }
  func.func @transform_5(%arg0: i32, %arg1: i32, %arg2: memref<3xi32, #tpu.memory_space<smem>>) -> (i32, i32, i32) {
    %0 = arith.index_cast %arg1 : i32 to index
    %1 = memref.load %arg2[%0] : memref<3xi32, #tpu.memory_space<smem>>
    %c0_i32 = arith.constant 0 : i32
    %c0_i32_0 = arith.constant 0 : i32
    %c0_i32_1 = arith.constant 0 : i32
    return %1, %c0_i32, %c0_i32_0 : i32, i32, i32
  }
  func.func @transform_6(%arg0: i32, %arg1: i32, %arg2: memref<3xi32, #tpu.memory_space<smem>>) -> (i32, i32, i32) {
    %0 = arith.index_cast %arg1 : i32 to index
    %1 = memref.load %arg2[%0] : memref<3xi32, #tpu.memory_space<smem>>
    %c0_i32 = arith.constant 0 : i32
    %c0_i32_0 = arith.constant 0 : i32
    %c0_i32_1 = arith.constant 0 : i32
    return %1, %c0_i32, %c0_i32_0 : i32, i32, i32
  }
  func.func @transform_7(%arg0: i32, %arg1: i32, %arg2: memref<3xi32, #tpu.memory_space<smem>>) -> (i32, i32, i32) {
    %c0_i32 = arith.constant 0 : i32
    %c0_i32_0 = arith.constant 0 : i32
    %c0_i32_1 = arith.constant 0 : i32
    return %arg0, %c0_i32, %c0_i32_0 : i32, i32, i32
  }
}

</mosaic_0001>

<bundles_post_ra>
// kernel: _lambda_.1
= control target key start
LH: loop header
LB: loop body
LE: loop exit
PB: predicated region body
PF: predicated region fallthrough
CT: control target
= control target key end

     0   :  { %s3596_s0 = inlined_call_operand.vmem [shape: s32[3], index: 0, kind: input, shape index: {}]   ;;  %s3597_s1 = inlined_call_operand.vmem [shape: bf16[2,16,128], index: 1, kind: input, shape index: {}]   ;;  %s3598_s2 = inlined_call_operand.hbm [shape: bf16[3,256,128], index: 2, kind: input, shape index: {}]   ;;  %s3599_s3 = inlined_call_operand.vmem [shape: f32[3,1,128], index: 3, kind: input, shape index: {}]   ;;  %s3600_s4 = inlined_call_operand.hbm [shape: bf16[3,256,128], index: 4, kind: input, shape index: {}]   ;;  %s3601_s5 = inlined_call_operand.vmem [shape: f32[3,1,128], index: 5, kind: input, shape index: {}]   ;;  %s3602_s6 = inlined_call_operand.hbm [shape: bf16[2,128,128], index: 6, kind: input, shape index: {}]   ;;  %s3603_s7 = inlined_call_operand.vmem [shape: f32[2,1,128], index: 7, kind: input, shape index: {}]   ;;  %s3604_s8 = inlined_call_operand.vmem [shape: f32[2,16,128], index: 8, kind: output, shape index: {}]  }
   0x1   :  { %3618 = sst [smem:[#allocation21_spill]] %s3598_s2  ;;  %s13_s29 = sshll.u32 %s3596_s0, 4  ;;  %s14_s29 = int_to_ptr.vmem [resolvable:$true] %s13_s29 }
   0x2   :  { %3619 = sst [smem:[#allocation22_spill]] %s3599_s3  ;;  %s2826_s30 = scalar_lea.vmem %s14_s29, 16 }
   0x3   :  { %3620 = sst [smem:[#allocation23_spill]] %s3600_s4  ;;  %p2827_p0 = scmp.ne.s32.totalorder %s14_s29, %s2826_s30 }
   0x4   :  { %3621 = sst [smem:[#allocation24_spill]] %s3601_s5  ;;  %p2831_p1 = scmp.lt.s32.totalorder %s14_s29, %s14_s29 }
   0x5   :  { %3622 = sst [smem:[#allocation25_spill]] %s3602_s6  ;;  %p2832_p2 = scmp.lt.s32.totalorder %s2826_s30, %s2826_s30 }
   0x6   :  { %3623 = sst [smem:[#allocation26_spill]] %s3603_s7 }
   0x7   :  { %3624 = sst [smem:[#allocation27_spill]] %s3604_s8  ;;  %p2833_p3 = por %p2832_p2, %p2831_p1 }
   0x9   :  { %p2834_p4 = pnand %p2833_p3, %p2827_p0 }
   0xb   :  { %2837 = shalt.err (!%p2834_p4)  }
   0xc   :  { %s3030_s9 = smov [#allocation4]  }
   0xd   :  { %16 = dma.vmem_to_smem %s14_s29, 16, %s3030_s9, [#allocation3] }
   0xe   :  { %2972 = dma.done.wait [#allocation3], 16 }
   0xf   :  { %2973 = vsyncadd [#allocation3], 4294967280 }
  0x10   :  { %18 = sfence }
  0x11   :  { %19 = vsyncpa [#allocation6], 0 }
  0x12   :  { %21 = vsyncpa [#allocation6 + $0x1], 0 }
  0x13   :  { %22 = vsyncpa [#allocation8], 0 }
  0x14   :  { %24 = vsyncpa [#allocation8 + $0x1], 0  ;;  %s3089_s10 = smov 0   ;;  %s3091_s0 = smov 0  }
  0x15   :  { %s3093_s11 = smov 0   ;;  %s3095_s12 = smov 0  }
  0x16   :  { %s3097_s13 = smov 0   ;;  %s3099_s14 = smov 0  }
  0x17   :  { %s3101_s15 = smov 0   ;;  %s3103_s16 = smov 0  }
  0x18   :  { %s3105_s17 = smov 0   ;;  %s3107_s18 = smov 0  }
  0x19   :  { %s3109_s19 = smov 0  }
  0x1a LB: > { %3625 = sst [smem:[#allocation16_spill]] %s3020_s17  ;;  %s3605_s20 = sadd.s32 4294967295, %s3028_s19   ;;  %s3028_s19 = sphi %s3109_s19, %s30_s19   ;;  %s3024_s18 = sphi %s3107_s18, %s3659_s18   ;;  %s3020_s17 = sphi %s3105_s17, %s3658_s17   ;;  %s3016_s16 = sphi %s3103_s16, %s3657_s16   ;;  %s3012_s15 = sphi %s3101_s15, %s3656_s15   ;;  %s3008_s14 = sphi %s3099_s14, %s3665_s14   ;;  %s3004_s13 = sphi %s3097_s13, %s3664_s13   ;;  %s3000_s12 = sphi %s3095_s12, %s3663_s12   ;;  %s2996_s11 = sphi %s3093_s11, %s3662_s11   ;;  %s2992_s0 = sphi %s3091_s0, %s3661_s0   ;;  %s2988_s10 = sphi %s3089_s10, %s3660_s10  }
  0x1b   : > { %3626 = sst [smem:[#allocation17_spill]] %s3024_s18  ;;  %s39_s21 = sadd.s32 1, %s3020_s17 }
  0x1c   : > { %p40_p5 = scmp.ge.s32.totalorder %s39_s21, 3  ;;  %s42_s22 = sadd.s32 1, %s3024_s18 }
  0x1d   : > { %s75_s23 = sadd.s32 1, %s3008_s14  ;;  %p82_p6 = scmp.ne.s32.totalorder %s3008_s14, %s3004_s13 }
  0x1e   : > { %s3667_s21 = smov (%p40_p5, %s39_s21), 0  ;;  %s3669_s22 = smov (!%p40_p5, %s42_s22), %s3024_s18 }
  0x1f   : > { %3627 = sst [smem:[#allocation18_spill]] %s3667_s21  ;;  %s72_s24 = ssub.s32 %s3020_s17, %s3667_s21 }
  0x20   : > { %p3611_p7 = scmp.eq.s32.totalorder %s3028_s19, 0  ;;  %p44_p8 = scmp.ge.s32.totalorder %s3669_s22, 2 }
  0x21   : > { %p73_p9 = scmp.eq.s32.totalorder %s72_s24, 0  ;;  %p88_p11 = scmp.ne.s32.totalorder %s3004_s13, %s3000_s12 }
  0x22   : > { %p84_p10 = por %p3611_p7, %p82_p6  ;;  %s3671_s22 = smov (%p44_p8, %s3669_s22), 0 }
  0x23   : > { %3628 = sst [smem:[#allocation19_spill]] %s3671_s22  ;;  %p3164_p12 = scmp.eq.s32.totalorder %s3605_s20, 0 }
  0x24   : > { %s3160_s25 = scalar_select %p73_p9, %s3008_s14, %s75_s23  }
  0x25   : > { %s3169_s27 = sld [smem:[#allocation4 + %s3020_s17]]  ;;  %p3176_p13 = por %p3164_p12, %p88_p11 }
  0x26   : > { %3629 = sst [smem:[#allocation20_spill]] %s3160_s25  ;;  %p3610_p0 = scmp.lt.s32.totalorder %s3028_s19, 6 }
  0x27   : > { %s3172_s28 = sld [smem:[#allocation4 + %s3667_s21]]  ;;  %s3607_s30 = sand.u32 1, %s3008_s14  }
  0x28   : > { %s3631_s29 = scalar_select %p3176_p13, 1, 0 }
  0x29   : > { %s3609_s9 = sshll.u32 %s3020_s17, 11  ;;  %s3185_s12 = sshll.u32 %s3607_s30, 7 }
  0x2a   : > { %p3189_p1 = pnand %p3610_p0, %p84_p10  ;;  %s307_s24 = sand.u32 1, %s3028_s19  }
  0x2b   : > { %s3633_s4 = sld [smem:[#allocation23_spill]]  ;;  %s311_s30 = scalar_lea.vmem [#allocation7], %s3185_s12 }
  0x2c   : > { %s318_s18 = sshll.u32 %s311_s30, 4  ;;  %s3205_s25 = scalar_lea.sflag [#allocation8], %s307_s24  ;;  %s3202_s18 = int_to_ptr.vmem [resolvable:$true] %s318_s18 }
  0x2d   : > { %p2840_p4 = pneg %p3189_p1 }
  0x31   : > { %s3199_s21 = scalar_lea.hbm %s3633_s4, %s3609_s9  ;;  %s2843_s9 = scalar_lea.hbm %s3633_s4, 6144 }
  0x32   : > { %s2838_s7 = scalar_lea.hbm %s3199_s21, 2048  ;;  %p2844_p8 = scmp.lt.u32.totalorder %s3199_s21, %s3633_s4 }
  0x33   : > { %p2839_p3 = scmp.ne.s32.totalorder %s3199_s21, %s2838_s7  ;;  %p2845_p9 = scmp.lt.u32.totalorder %s2843_s9, %s2838_s7 }
  0x34   : > { %p2847_p11 = scmp.lt.u32.totalorder %s2838_s7, %s3199_s21 }
  0x35   : > { %p2841_p5 = pnand %p2840_p4, %p2839_p3  ;;  %p2846_p10 = por %p2845_p9, %p2844_p8 }
  0x37   : > { %p2842_p6 = pneg %p2841_p5  ;;  %p2848_p0 = por %p2847_p11, %p2846_p10 }
  0x39   : > { %p2849_p7 = pnand %p2848_p0, %p2842_p6 }
  0x3b   : > { %2852 = shalt.err (!%p2849_p7)
}
  0x3c   : > { %s2853_s30 = scalar_lea.vmem %s3202_s18, 2048  ;;  %s3031_s24 = smov [#allocation7]  }
  0x3d   : > { %p2854_p3 = scmp.ne.s32.totalorder %s3202_s18, %s2853_s30  ;;  %s2858_s20 = sshll.u32 %s3031_s24, 4  ;;  %s2859_s20 = int_to_ptr.vmem [resolvable:$false] %s2858_s20 }
  0x3e   : > { %s2860_s5 = scalar_lea.vmem %s2859_s20, 4096  ;;  %p2861_p13 = scmp.lt.s32.totalorder %s3202_s18, %s2859_s20 }
  0x3f   : > { %p2856_p5 = pnand %p2854_p3, %p2840_p4  ;;  %p2862_p8 = scmp.lt.s32.totalorder %s2860_s5, %s2853_s30 }
  0x41   : > { %p2857_p2 = pneg %p2856_p5  ;;  %p2863_p9 = por %p2862_p8, %p2861_p13 }
  0x43   : > { %p2864_p10 = pnand %p2863_p9, %p2857_p2 }
  0x45   : > { %2867 = shalt.err (!%p2864_p10)
}
  0x46   : > { %s3613_s7 = smov 64   ;;  %s3615_s8 = smov 4  }
  0x47   : > { %2594 = dma.hbm_to_vmem [thread:$0]  (!%p3189_p1), %s3199_s21, 2048, %s3202_s18, %s3205_s25, %s3613_s7, %s3613_s7, %s3615_s8  }
  0x48   : > { %p362_p7 = scmp.lt.s32.totalorder %s3028_s19, 7  ;;  %p3634_p13 = scmp.ge.s32.totalorder %s3028_s19, 1 }
  0x49   : > { %s3636_s22 = sshll.u32 %s3020_s17, 11  ;;  %s3637_s2 = sld [smem:[#allocation21_spill]] }
  0x4a   : > { %p3239_p0 = pnand %p3634_p13, %p362_p7  ;;  %s284_s5 = scalar_lea.vmem [#allocation5], %s3185_s12 }
  0x4b   : > { %s291_s4 = sshll.u32 %s284_s5, 4  ;;  %s3638_s18 = sand.u32 1, %s3008_s14   ;;  %s3251_s4 = int_to_ptr.vmem [resolvable:$true] %s291_s4 }
  0x4c   : > { %s3635_s9 = scalar_select %p3239_p0, 1, 0 }
  0x4d   : > { %s3255_s21 = scalar_lea.sflag [#allocation6], %s3638_s18 }
  0x4f   : > { %s3248_s20 = scalar_lea.hbm %s3637_s2, %s3636_s22  ;;  %s2873_s24 = scalar_lea.hbm %s3637_s2, 6144 }
  0x50   : > { %s2868_s7 = scalar_lea.hbm %s3248_s20, 2048  ;;  %p2874_p3 = scmp.lt.u32.totalorder %s3248_s20, %s3637_s2 }
  0x51   : > { %p2869_p2 = scmp.ne.s32.totalorder %s3248_s20, %s2868_s7  ;;  %p2875_p5 = scmp.lt.u32.totalorder %s2873_s24, %s2868_s7 }
  0x52   : > { %p2877_p9 = scmp.lt.u32.totalorder %s2868_s7, %s3248_s20 }
  0x53   : > { %p2871_p6 = pnand %p2869_p2, %p2840_p4  ;;  %p2876_p8 = por %p2875_p5, %p2874_p3 }
  0x55   : > { %p2872_p11 = pneg %p2871_p6  ;;  %p2878_p10 = por %p2877_p9, %p2876_p8 }
  0x57   : > { %p2879_p7 = pnand %p2878_p10, %p2872_p11 }
  0x59   : > { %2882 = shalt.err (!%p2879_p7)
}
  0x5a   : > { %s2883_s12 = scalar_lea.vmem %s3251_s4, 2048  ;;  %s3034_s5 = smov [#allocation5]  }
  0x5b   : > { %p2884_p13 = scmp.ne.s32.totalorder %s3251_s4, %s2883_s12  ;;  %s2888_s18 = sshll.u32 %s3034_s5, 4  ;;  %s2889_s18 = int_to_ptr.vmem [resolvable:$false] %s2888_s18 }
  0x5c   : > { %s2890_s3 = scalar_lea.vmem %s2889_s18, 4096  ;;  %p2891_p0 = scmp.lt.s32.totalorder %s3251_s4, %s2889_s18 }
  0x5d   : > { %p2886_p2 = pnand %p2884_p13, %p2840_p4  ;;  %p2892_p3 = scmp.lt.s32.totalorder %s2890_s3, %s2883_s12 }
  0x5f   : > { %p2887_p6 = pneg %p2886_p2  ;;  %p2893_p5 = por %p2892_p3, %p2891_p0 }
  0x61   : > { %p2894_p8 = pnand %p2893_p5, %p2887_p6 }
  0x63   : > { %2897 = shalt.err (!%p2894_p8)
}
  0x64   : > { %s3639_s7 = smov 4   ;;  %s3640_s8 = smov 64  }
  0x65   : > { %2591 = dma.hbm_to_vmem [thread:$0]  (!%p3189_p1), %s3248_s20, 2048, %s3251_s4, %s3255_s21, %s3640_s8, %s3640_s8, %s3639_s7  }
  0x66   : > { %s178_s23 = ssub.s32 %s3169_s27, %s3172_s28  ;;  %s181_s30 = sadd.s32 1, %s2996_s11 }
  0x67   : > { %p179_p4 = scmp.eq.s32.totalorder %s178_s23, 0  ;;  %p188_p0 = scmp.ne.s32.totalorder %s2996_s11, %s2992_s0 }
  0x68   : > { %p194_p11 = scmp.ne.s32.totalorder %s2992_s0, %s2988_s10  ;;  %p3641_p9 = scmp.eq.s32.totalorder %s3028_s19, 0 }
  0x69   : > { %s3292_s22 = scalar_select %p179_p4, %s2996_s11, %s181_s30  }
  0x6a   : > { %p190_p10 = por %p188_p0, %p3641_p9  ;;  %p3298_p7 = por %p194_p11, %p3164_p12 }
  0x6b   : > { %s336_s12 = sand.u32 1, %s2996_s11   ;;  %p3643_p13 = scmp.lt.s32.totalorder %s3028_s19, 6 }
  0x6c   : > { %s2207_s5 = sshll.u32 %s336_s12, 6  ;;  %s3647_s6 = sld [smem:[#allocation25_spill]] }
  0x6d   : > { %p3305_p2 = pnand %p3643_p13, %p190_p10  ;;  %p3645_p1 = pmov %p3643_p13 }
  0x6e   : > { %s2582_s4 = scalar_select %p190_p10, [#allocation4], [#allocation10] }
  0x6f   : > { %s2583_s10 = scalar_select %p190_p10, %s3020_s17, 0 }
  0x70   : > { %s3673_s4 = smov (!%p3645_p1, %s2582_s4), [#allocation11]  ;;  %p3646_p6 = pmov %p3645_p1 }
  0x71   : > { %s338_s27 = scalar_lea.vmem [#allocation9], %s2207_s5  ;;  %p2900_p3 = pneg %p3305_p2 }
  0x72   : > { %s3675_s10 = smov (!%p3646_p6, %s2583_s10), 0  ;;  %s346_s28 = sshll.u32 %s338_s27, 4  ;;  %s3314_s28 = int_to_ptr.vmem [resolvable:$true] %s346_s28 }
  0x73   : > { %s339_s26 = sld [smem:[%s3673_s4 + %s3675_s10]]  ;;  %s2903_s4 = scalar_lea.hbm %s3647_s6, 2048 }
  0x79   : > { %s2377_s20 = sshll.u32 %s339_s26, 10 }
  0x7a   : > { %s3319_s23 = scalar_lea.hbm %s3647_s6, %s2377_s20 }
  0x7b   : > { %s2898_s30 = scalar_lea.hbm %s3319_s23, 1024  ;;  %p2904_p4 = scmp.lt.u32.totalorder %s3319_s23, %s3647_s6 }
  0x7c   : > { %p2899_p12 = scmp.ne.s32.totalorder %s3319_s23, %s2898_s30  ;;  %p2905_p0 = scmp.lt.u32.totalorder %s2903_s4, %s2898_s30 }
  0x7d   : > { %p2907_p9 = scmp.lt.u32.totalorder %s2898_s30, %s3319_s23 }
  0x7e   : > { %p2901_p5 = pnand %p2900_p3, %p2899_p12  ;;  %p2906_p11 = por %p2905_p0, %p2904_p4 }
  0x80   : > { %p2902_p8 = pneg %p2901_p5  ;;  %p2908_p10 = por %p2907_p9, %p2906_p11 }
  0x82   : > { %p2909_p13 = pnand %p2908_p10, %p2902_p8 }
  0x84   : > { %2912 = shalt.err (!%p2909_p13)
}
  0x85   : > { %s2913_s27 = scalar_lea.vmem %s3314_s28, 1024  ;;  %s3035_s20 = smov [#allocation9]  }
  0x86   : > { %p2914_p1 = scmp.ne.s32.totalorder %s3314_s28, %s2913_s27  ;;  %s2918_s21 = sshll.u32 %s3035_s20, 4  ;;  %s2919_s21 = int_to_ptr.vmem [resolvable:$false] %s2918_s21 }
  0x87   : > { %s2920_s3 = scalar_lea.vmem %s2919_s21, 2048  ;;  %p2921_p5 = scmp.lt.s32.totalorder %s3314_s28, %s2919_s21 }
  0x88   : > { %p2916_p6 = pnand %p2914_p1, %p2900_p3  ;;  %p2922_p4 = scmp.lt.s32.totalorder %s2920_s3, %s2913_s27 }
  0x8a   : > { %p2917_p12 = pneg %p2916_p6  ;;  %p2923_p0 = por %p2922_p4, %p2921_p5 }
  0x8c   : > { %p2924_p11 = pnand %p2923_p0, %p2917_p12 }
  0x8e   : > { %2927 = shalt.err (!%p2924_p11)
}
  0x8f   : > { %2599 = dma.hbm_to_vmem [thread:$0]  (!%p3305_p2), %s3319_s23, 1024, %s3314_s28, %s3205_s25, %s3640_s8, %s3640_s8, %s3639_s7  }
  0x90   : > { %p3648_p3 = scmp.ne.s32.totalorder %s3635_s9, 0 }
  0x91   : > { %s368_s30 = sand.u32 (!%p3648_p3), 1, %s3004_s13   ;;  %p3649_p8 = scmp.ne.s32.totalorder (!%p3648_p3), %s3631_s29, 0 }
  0x92   : > { %366 = sbr.rel (%p3648_p3) target bundleno = 1664 (0x680), region = 48  ;;  %s2211_s12 = sshll.u32 (!%p3648_p3), %s368_s30, 7 }
  0x93   : > { %s369_s5 = scalar_lea.sflag (!%p3648_p3), [#allocation6], %s368_s30  ;;  %s3353_s4 = scalar_lea.vmem (!%p3648_p3), [#allocation5], %s2211_s12 }
  0x99   : > { %2975 = dma.done.wait (%p3649_p8), %s369_s5, 2048  }
  0x9a   : > { %2977 = vsyncadd (%p3649_p8), %s369_s5, 4294965248  ;;  %s3650_s18 = sadd.s32 4294967295, %s3028_s19   ;;  %s3361_s7 = scalar_lea.vmem [#allocation7], %s2211_s12 }
  0x9b   : > { %s377_s10 = sand.u32 1, %s3650_s18  }
  0x9c   : > { %s378_s25 = scalar_lea.sflag [#allocation8], %s377_s10 }
  0x9d   : > { %2979 = dma.done.wait (%p3649_p8), %s378_s25, 2048  }
  0x9e   : > { %2981 = vsyncadd (%p3649_p8), %s378_s25, 4294965248  ;;  %s388_s9 = sand.u32 1, %s2992_s0  }
  0x9f   : > { %s2213_s8 = sshll.u32 %s388_s9, 6 }
  0xa0   : > { %s3368_s28 = scalar_lea.vmem [#allocation9], %s2213_s8 }
  0xa1   : > { %2983 = dma.done.wait (%p3298_p7), %s378_s25, 1024  }
  0xa2   : > { %2985 = vsyncadd (%p3298_p7), %s378_s25, 4294966272  ;;  %p446_p2 = scmp.lt.s32.totalorder %s3016_s16, 1  ;;  %p451_p9 = scmp.lt.s32.totalorder %s3012_s15, 2 }
  0xa3   : > { %s458_s29 = sld [smem:[#allocation4 + %s3012_s15]]  ;;  %p2218_p10 = scmp.ne.s32.totalorder %s3012_s15, 0 }
  0xa4   : > { %s3677_s16 = smov (!%p446_p2, %s3016_s16), 1  ;;  %s3651_s12 = sld [smem:[#allocation22_spill]]  ;;  %v2697_v0 = vld [vmem:[%s3353_s4 + $0x40] sm:$0xff] (!%p2218_p10)   ;;  %v3036_v2 = vmov (!%p2218_p10), 0   ;;  %v2699_v3 = vld [vmem:[%s3353_s4 + $0x48] sm:$0xff] (!%p2218_p10)   ;;  %v3037_v4 = vmov (!%p2218_p10), 0.0  }
  0xa5   : > { %s452_s23 = scalar_select %p451_p9, %s3012_s15, 2 }
  0xa6   : > { %s2378_s26 = sshll.u32 %s3677_s16, 3  ;;  %s2379_s27 = sshll.u32 %s3677_s16, 4  ;;  %v2698_v1 = vld [vmem:[%s3353_s4] sm:$0xff] (!%p2218_p10)   ;;  %473 = vst [vmem:[#allocation2] sm:$0xf] (!%p2218_p10), %v3036_v2  ;;  %2399 = vmatprep.subr.bf16.mxu1 (!%p2218_p10), %v2697_v0  ;;  %2540 = vmatprep.subr.bf16.mxu0 (!%p2218_p10), %v3037_v4  ;;  %v2700_v5 = vld [vmem:[%s3353_s4 + $0x8] sm:$0xff] (!%p2218_p10)  }
  0xa7   : > { %s3382_s3 = scalar_lea.vmem %s3597_s1, %s2378_s26  ;;  %s3652_s25 = sld [smem:[#allocation24_spill]]  ;;  %2400 = vmatpush3.bf16.msra.mxu1 (!%p2218_p10), %v2698_v1  ;;  %vm3038_vm0 = vmmov (!%p2218_p10), 0   ;;  %v2701_v6 = vld [vmem:[%s3353_s4 + $0x50] sm:$0xff] (!%p2218_p10)   ;;  %v2703_v8 = vld [vmem:[%s3353_s4 + $0x58] sm:$0xff] (!%p2218_p10)   ;;  %v2705_v10 = vld [vmem:[%s3353_s4 + $0x60] sm:$0xff] (!%p2218_p10)  }
  0xa8   : > { %s3653_s6 = sld [smem:[#allocation27_spill]]  ;;  %s3654_s20 = sld [smem:[#allocation26_spill]]  ;;  %2556 = vmatprep.mubr.msk.bf16.mxu0 (!%p2218_p10), %vm3038_vm0, %v3037_v4  ;;  %2401 = vmatprep.subr.bf16.mxu1 (!%p2218_p10), %v2699_v3  ;;  %v2702_v7 = vld [vmem:[%s3353_s4 + $0x10] sm:$0xff] (!%p2218_p10)   ;;  %v2704_v9 = vld [vmem:[%s3353_s4 + $0x18] sm:$0xff] (!%p2218_p10)   ;;  %v2706_v11 = vld [vmem:[%s3353_s4 + $0x20] sm:$0xff] (!%p2218_p10)  }
  0xa9   : > { %p459_p7 = scmp.lt.s32.totalorder %s458_s29, 1  ;;  %472 = sbr.rel (%p2218_p10) target bundleno = 672 (0x2a0), region = 64  ;;  %v2707_v12 = vld [vmem:[%s3353_s4 + $0x68] sm:$0xff] (!%p2218_p10)   ;;  %v474_v13 = vld [vmem:[%s3382_s3] sm:$0xff] (!%p2218_p10)   ;;  %v2715_v14 = vld [vmem:[%s3368_s28] sm:$0xff] (!%p2218_p10)  }
  0xaa   : > { %s3387_s5 = scalar_lea.vmem %s3651_s12, %s452_s23  ;;  %476 = vst [vmem:[#allocation2 + $0x4] sm:$0xff] (!%p2218_p10), %v474_v13   ;;  %2541 = vmatpush3.bf16.msra.mxu0 (!%p2218_p10), %v2715_v14  ;;  %v2716_v15 = vld [vmem:[%s3368_s28 + $0x8] sm:$0xff] (!%p2218_p10)   ;;  %v2709_v17 = vld [vmem:[%s3353_s4 + $0x70] sm:$0xff] (!%p2218_p10)   ;;  %v2711_v21 = vld [vmem:[%s3353_s4 + $0x78] sm:$0xff] (!%p2218_p10)   ;;  %vm650_vm1 = vsmask.f32 (!%p2218_p10), 4352 }
  0xab   : > { %s3679_s29 = smov (!%p459_p7, %s458_s29), 1  ;;  %2402 = vmatpush3.bf16.msra.mxu1 (!%p2218_p10), %v2700_v5  ;;  %v2708_v16 = vld [vmem:[%s3353_s4 + $0x28] sm:$0xff] (!%p2218_p10)   ;;  %2542 = vmatprep.subr.bf16.mxu0 (!%p2218_p10), %v3037_v4  ;;  %v2710_v18 = vld [vmem:[%s3353_s4 + $0x30] sm:$0xff] (!%p2218_p10)   ;;  %v2712_v24 = vld [vmem:[%s3353_s4 + $0x38] sm:$0xff] (!%p2218_p10)  }
  0xac   : > { %2403 = vmatprep.subr.bf16.mxu1 (!%p2218_p10), %v2701_v6  ;;  %v2717_v20 = vld [vmem:[%s3368_s28 + $0x10] sm:$0xff] (!%p2218_p10)   ;;  %v2718_v28 = vld [vmem:[%s3368_s28 + $0x18] sm:$0xff] (!%p2218_p10)   ;;  %v2719_v35 = vld [vmem:[%s3368_s28 + $0x20] sm:$0xff] (!%p2218_p10)  }
  0xad   : > { %s3392_s9 = scalar_lea.vmem %s3652_s25, %s452_s23  ;;  %v598_v19 = vld [vmem:[#allocation2] sm:$0x8] (!%p2218_p10)  ;;  %v2720_v43 = vld [vmem:[%s3368_s28 + $0x28] sm:$0xff] (!%p2218_p10)   ;;  %v2722_v53 = vld [vmem:[%s3368_s28 + $0x38] sm:$0xff] (!%p2218_p10)  }
  0xae   : > { %s3397_s17 = scalar_lea.vmem %s3653_s6, %s2379_s27  ;;  %s3402_s21 = scalar_lea.vmem %s3654_s20, %s3679_s29  ;;  %2543 = vmatpush3.bf16.msra.mxu0 (!%p2218_p10), %v2716_v15  ;;  %v2721_v52 = vld [vmem:[%s3368_s28 + $0x30] sm:$0xff] (!%p2218_p10)   ;;  %v2723_v54 = vld [vmem:[%s3361_s7 + $0x40] sm:$0xff] (!%p2218_p10)   ;;  %v2725_v56 = vld [vmem:[%s3361_s7 + $0x48] sm:$0xff] (!%p2218_p10)  }
  0xaf   : > { %2404 = vmatpush3.bf16.msra.mxu1 (!%p2218_p10), %v2702_v7  ;;  %2544 = vmatprep.subr.bf16.mxu0 (!%p2218_p10), %v3037_v4  ;;  %v2724_v55 = vld [vmem:[%s3361_s7] sm:$0xff] (!%p2218_p10)   ;;  %v2726_v57 = vld [vmem:[%s3361_s7 + $0x8] sm:$0xff] (!%p2218_p10)   ;;  %v2727_v58 = vld [vmem:[%s3361_s7 + $0x50] sm:$0xff] (!%p2218_p10)  }
  0xb0   : > { %2405 = vmatprep.subr.bf16.mxu1 %v2703_v8  ;;  %v2728_v59 = vld [vmem:[%s3361_s7 + $0x10] sm:$0xff]   ;;  %v2729_v60 = vld [vmem:[%s3361_s7 + $0x58] sm:$0xff]   ;;  %v2731_v62 = vld [vmem:[%s3361_s7 + $0x60] sm:$0xff]  }
  0xb1   : > { %v478_v22 = vld [vmem:[#allocation2 + $0x4] sm:$0xf]  ;;  %v479_v23 = vld [vmem:[#allocation2 + $0x8] sm:$0xf]  ;;  %v2732_v63 = vld [vmem:[%s3361_s7 + $0x20] sm:$0xff]  }
  0xb2   : > { %v2220_v25 = vcombine.low %v478_v22, %v479_v23  ;;  %v2229_v26 = vcombine.low %v598_v19, %v478_v22  ;;  %v2230_v27 = vcombine.low %v479_v23, %v479_v23  ;;  %2545 = vmatpush3.bf16.msra.mxu0 %v2717_v20  ;;  %v2730_v61 = vld [vmem:[%s3361_s7 + $0x18] sm:$0xff]   ;;  %v2733_v0 = vld [vmem:[%s3361_s7 + $0x68] sm:$0xff]   ;;  %v2735_v2 = vld [vmem:[%s3361_s7 + $0x70] sm:$0xff]  }
  0xb3   : > { %2406 = vmatpush3.bf16.msra.mxu1 %v2704_v9  ;;  %2546 = vmatprep.subr.bf16.mxu0 %v3037_v4  ;;  %v2734_v1 = vld [vmem:[%s3361_s7 + $0x28] sm:$0xff]   ;;  %v2736_v3 = vld [vmem:[%s3361_s7 + $0x30] sm:$0xff]   ;;  %v2738_v5 = vld [vmem:[%s3361_s7 + $0x38] sm:$0xff]  }
  0xb4   : > { %2407 = vmatprep.subr.bf16.mxu1 %v2705_v10  ;;  %v604_v29 = vshrl.u32 %v2220_v25, 16  ;;  %v607_v30 = vshll.u32 %v2220_v25, 16  ;;  %v652_v31 = vshrl.u32 %v2229_v26, 16  ;;  %v655_v32 = vshll.u32 %v2229_v26, 16  ;;  %v2231_v7 = vld [vmem:[%s3387_s5] ss:$0 sm:$0xff] }
  0xb5   : > { %v660_v33 = vshrl.u32 %v2230_v27, 16  ;;  %v663_v34 = vshll.u32 %v2230_v27, 16 }
  0xb6   : > { %v606_v36 = vrot.slane %v604_v29, 4  ;;  %v609_v37 = vrot.slane %v607_v30, 5  ;;  %v654_v38 = vrot.slane %v652_v31, 3  ;;  %v657_v39 = vrot.slane %v655_v32, 4  ;;  %2547 = vmatpush3.bf16.msra.mxu0 %v2718_v28 }
  0xb7   : > { %2408 = vmatpush3.bf16.msra.mxu1 %v2706_v11  ;;  %v662_v40 = vrot.slane %v660_v33, 3  ;;  %v665_v41 = vrot.slane %v663_v34, 4  ;;  %2548 = vmatprep.subr.bf16.mxu0 %v3037_v4 }
  0xb8   : > { %2409 = vmatprep.subr.bf16.mxu1 %v2707_v12  ;;  %v610_v42 = vor.u32 %v609_v37, %v606_v36  ;;  %v658_v46 = vor.u32 %v657_v39, %v654_v38 }
  0xb9   : > { %v666_v47 = vor.u32 %v665_v41, %v662_v40 }
  0xba   : > { %v669_v44 = vshrl.u32 %v610_v42, 16  ;;  %v672_v45 = vshll.u32 %v610_v42, 16  ;;  %2549 = vmatpush3.bf16.msra.mxu0 %v2719_v35 }
  0xbb   : > { %2410 = vmatpush3.bf16.msra.mxu1 %v2708_v16  ;;  %2550 = vmatprep.subr.bf16.mxu0 %v3037_v4  ;;  %v667_v51 = vsel %vm650_vm1, %v658_v46, %v666_v47 }
  0xbc   : > { %2411 = vmatprep.subr.bf16.mxu1 %v2709_v17  ;;  %v671_v48 = vrot.slane %v669_v44, 3  ;;  %v674_v49 = vrot.slane %v672_v45, 4 }
  0xbe   : > { %v675_v50 = vor.u32 %v674_v49, %v671_v48  ;;  %2551 = vmatpush3.bf16.msra.mxu0 %v2720_v43 }
  0xbf   : > { %2412 = vmatpush3.bf16.msra.mxu1 %v2710_v18  ;;  %2552 = vmatprep.subr.bf16.mxu0 %v3037_v4 }
  0xc0   : > { %2413 = vmatprep.subr.bf16.mxu1 %v2711_v21  ;;  %807 = vmatprep.mubr.bf16.mxu1 %v675_v50 }
  0xc2   : > { %2553 = vmatpush3.bf16.msra.mxu0 %v2721_v52 }
  0xc3   : > { %2414 = vmatpush3.bf16.msra.mxu1 %v2712_v24  ;;  %2554 = vmatprep.subr.bf16.mxu0 %v3037_v4  ;;  %v2737_v4 = vld [vmem:[%s3361_s7 + $0x78] sm:$0xff]   ;;  %v828_v24 = vld [vmem:[#allocation2] sm:$0x8] }
  0xc6   : > { %808 = vmatmul.mubr.bf16.vlgmr.msra.gmra.mrb[0].mxu1 %v667_v51  ;;  %2555 = vmatpush3.bf16.msra.mxu0 %v2722_v53  ;;  %v2253_v51 = vld [vmem:[%s3392_s9] ss:$0 sm:$0xff] }
  0xc7   : > { %2421 = vmatprep.subr.bf16.mxu0 %v2723_v54 }
  0xc9   : > { %2557 = vmatmul.mubr.bf16.vlgmr.msra.gmra.mrb[0].mxu0 %v2220_v25 }
  0xca   : > { %2422 = vmatpush3.bf16.msra.mxu0 %v2724_v55  ;;  %v2219_v55 = vld [vmem:[%s3402_s21] ss:$0 sm:$0xff] }
  0xcb   : > { %2423 = vmatprep.subr.bf16.mxu0 %v2725_v56 }
  0xce   : > { %2424 = vmatpush3.bf16.msra.mxu0 %v2726_v57 }
  0xcf   : > { %2425 = vmatprep.subr.bf16.mxu0 %v2727_v58 }
  0xd2   : > { %2426 = vmatpush3.bf16.msra.mxu0 %v2728_v59 }
  0xd3   : > { %2427 = vmatprep.subr.bf16.mxu0 %v2729_v60 }
  0xd6   : > { %2428 = vmatpush3.bf16.msra.mxu0 %v2730_v61 }
  0xd7   : > { %2429 = vmatprep.subr.bf16.mxu0 %v2731_v62 }
  0xda   : > { %2430 = vmatpush3.bf16.msra.mxu0 %v2732_v63 }
  0xdb   : > { %2431 = vmatprep.subr.bf16.mxu0 %v2733_v0 }
  0xde   : > { %2432 = vmatpush3.bf16.msra.mxu0 %v2734_v1 }
  0xdf   : > { %2433 = vmatprep.subr.bf16.mxu0 %v2735_v2 }
  0xe2   : > { %2434 = vmatpush3.bf16.msra.mxu0 %v2736_v3 }
  0xe3   : > { %2435 = vmatprep.subr.bf16.mxu0 %v2737_v4 }
  0xe6   : > { %2436 = vmatpush3.bf16.msra.mxu0 %v2738_v5 }
 0x199   : > { %v2415_v6 = vpop.f32.mrb[0].mxu1 }
 0x19a   : > { %v2416_v8 = vpop.f32.mrb[1].mxu1 }
 0x19b   : > { %v2417_v9 = vadd.f32 %v2416_v8, %v2415_v6  ;;  %v2418_v10 = vpop.f32.mrb[2].mxu1 }
 0x19c   : > { %v2419_v11 = vpop.f32.mrb[3].mxu1  ;;  %v591_v18 = vpop.f32.mrb[0].mxu0 }
 0x19d   : > { %v810_v12 = vadd.f32 %v2417_v9, %v2231_v7  ;;  %v2420_v13 = vadd.f32 %v2419_v11, %v2418_v10  ;;  %v2558_v20 = vpop.f32.mrb[1].mxu0  ;;  %v592_v59 = vadd.f32 %v2219_v55, %v591_v18 }
 0x19e   : > { %v594_v21 = vpop.f32.mrb[2].mxu0 }
 0x19f   : > { %v816_v14 = vmax.f32 %v810_v12, 0.0  ;;  %v813_v15 = vadd.f32 %v2420_v13, %v2231_v7  ;;  %v2559_v22 = vpop.f32.mrb[3].mxu0  ;;  %v595_v62 = vadd.f32 %v2219_v55, %v594_v21 }
 0x1a1   : > { %v2380_v16 = vpack.c.bf16 %v816_v14, %v816_v14  ;;  %v817_v17 = vmax.f32 %v813_v15, 0.0 }
 0x1a3   : > { %826 = vst [vmem:[#allocation2 + $0x4] sm:$0xf] %v2380_v16  ;;  %v2381_v19 = vpack.c.bf16 %v817_v17, %v817_v17 }
 0x1a5   : > { %827 = vst [vmem:[#allocation2 + $0x8] sm:$0xf] %v2381_v19 }
 0x1aa   : > { %v829_v23 = vld [vmem:[#allocation2 + $0x4] sm:$0xf] }
 0x1ab   : > { %v2250_v27 = vcombine.low %v828_v24, %v829_v23 }
 0x1ac   : > { %v830_v25 = vld [vmem:[#allocation2 + $0x8] sm:$0xf] }
 0x1ad   : > { %v2252_v26 = vcombine.low %v829_v23, %v830_v25  ;;  %v2251_v28 = vcombine.low %v830_v25, %v830_v25  ;;  %v888_v35 = vshrl.u32 %v2250_v27, 16  ;;  %v891_v36 = vshll.u32 %v2250_v27, 16 }
 0x1af   : > { %v841_v29 = vshrl.u32 %v2252_v26, 16  ;;  %v844_v30 = vshll.u32 %v2252_v26, 16  ;;  %v896_v31 = vshrl.u32 %v2251_v28, 16  ;;  %v899_v32 = vshll.u32 %v2251_v28, 16 }
 0x1b0   : > { %v890_v42 = vrot.slane %v888_v35, 3  ;;  %v893_v43 = vrot.slane %v891_v36, 4 }
 0x1b1   : > { %v843_v33 = vrot.slane %v841_v29, 4  ;;  %v846_v34 = vrot.slane %v844_v30, 5  ;;  %v898_v38 = vrot.slane %v896_v31, 3  ;;  %v901_v39 = vrot.slane %v899_v32, 4 }
 0x1b2   : > { %v894_v48 = vor.u32 %v893_v43, %v890_v42 }
 0x1b3   : > { %v847_v37 = vor.u32 %v846_v34, %v843_v33  ;;  %v902_v46 = vor.u32 %v901_v39, %v898_v38 }
 0x1b5   : > { %v905_v40 = vshrl.u32 %v847_v37, 16  ;;  %v908_v41 = vshll.u32 %v847_v37, 16  ;;  %v903_v49 = vsel %vm650_vm1, %v894_v48, %v902_v46 }
 0x1b7   : > { %v907_v44 = vrot.slane %v905_v40, 3  ;;  %v910_v45 = vrot.slane %v908_v41, 4 }
 0x1b9   : > { %v911_v47 = vor.u32 %v910_v45, %v907_v44 }
 0x1bb   : > { %1043 = vmatprep.mubr.bf16.mxu0 %v911_v47 }
 0x1bc   : > { %1044 = vmatmul.mubr.bf16.vlgmr.msra.gmra.mrb[4].mxu0 %v903_v49 }
 0x28f   : > { %v2437_v50 = vpop.f32.mrb[4].mxu0 }
 0x290   : > { %v2438_v52 = vpop.f32.mrb[5].mxu0 }
 0x291   : > { %v2439_v53 = vadd.f32 %v2438_v52, %v2437_v50  ;;  %v2440_v54 = vpop.f32.mrb[6].mxu0 }
 0x292   : > { %v2441_v56 = vpop.f32.mrb[7].mxu0 }
 0x293   : > { %v1046_v57 = vadd.f32 %v2439_v53, %v2253_v51  ;;  %v2442_v58 = vadd.f32 %v2441_v56, %v2440_v54 }
 0x295   : > { %v1052_v60 = vmax.f32 %v1046_v57, 0.0  ;;  %v1049_v61 = vadd.f32 %v2442_v58, %v2253_v51 }
 0x297   : > { %v1054_v63 = vadd.f32 %v1052_v60, %v592_v59  ;;  %v1053_v0 = vmax.f32 %v1049_v61, 0.0 }
 0x299   : > { %v1056_v1 = vmax.f32 %v1054_v63, 0.0  ;;  %v1055_v2 = vadd.f32 %v1053_v0, %v595_v62 }
 0x29b   : > { %v2382_v3 = vpack.c.bf16 %v1056_v1, %v1056_v1  ;;  %v1057_v4 = vmax.f32 %v1055_v2, 0.0 }
 0x29d   : > { %1066 = vst [vmem:[#allocation2 + $0x4] sm:$0xf] %v2382_v3  ;;  %v2383_v5 = vpack.c.bf16 %v1057_v4, %v1057_v4 }
 0x29f   : > { %1067 = vst [vmem:[#allocation2 + $0x8] sm:$0xf] %v2383_v5 }
 0x2a0 PF: > { %p2272_p13 = scmp.ne.s32.totalorder %s3012_s15, 1 }
 0x2a1   : > { %v2742_v6 = vld [vmem:[%s3353_s4 + $0x40] sm:$0xff] (!%p2272_p13)   ;;  %v2744_v8 = vld [vmem:[%s3353_s4 + $0x48] sm:$0xff] (!%p2272_p13)   ;;  %v3039_v9 = vmov (!%p2272_p13), 0.0   ;;  %vm3040_vm2 = vmmov (!%p2272_p13), 0   ;;  %v2746_v11 = vld [vmem:[%s3353_s4 + $0x50] sm:$0xff] (!%p2272_p13)   ;;  %vm1240_vm3 = vcmask (!%p2272_p13), 1044480  }
 0x2a2   : > { %1071 = sbr.rel (%p2272_p13) target bundleno = 1169 (0x491), region = 68  ;;  %v2743_v7 = vld [vmem:[%s3353_s4] sm:$0xff] (!%p2272_p13)   ;;  %2452 = vmatprep.subr.bf16.mxu1 (!%p2272_p13), %v2742_v6  ;;  %2560 = vmatprep.subr.bf16.mxu0 (!%p2272_p13), %v3039_v9  ;;  %v2745_v10 = vld [vmem:[%s3353_s4 + $0x8] sm:$0xff] (!%p2272_p13)   ;;  %v2747_v12 = vld [vmem:[%s3353_s4 + $0x10] sm:$0xff] (!%p2272_p13)  }
 0x2a3   : > { %2453 = vmatpush3.bf16.msra.mxu1 (!%p2272_p13), %v2743_v7  ;;  %2576 = vmatprep.mubr.msk.bf16.mxu0 (!%p2272_p13), %vm3040_vm2, %v3039_v9  ;;  %v2748_v13 = vld [vmem:[%s3353_s4 + $0x58] sm:$0xff] (!%p2272_p13)   ;;  %v2750_v15 = vld [vmem:[%s3353_s4 + $0x60] sm:$0xff] (!%p2272_p13)   ;;  %v2752_v17 = vld [vmem:[%s3353_s4 + $0x68] sm:$0xff] (!%p2272_p13)  }
 0x2a4   : > { %2454 = vmatprep.subr.bf16.mxu1 (!%p2272_p13), %v2744_v8  ;;  %v2749_v14 = vld [vmem:[%s3353_s4 + $0x18] sm:$0xff] (!%p2272_p13)   ;;  %v2751_v16 = vld [vmem:[%s3353_s4 + $0x20] sm:$0xff] (!%p2272_p13)   ;;  %v2753_v20 = vld [vmem:[%s3353_s4 + $0x28] sm:$0xff] (!%p2272_p13)  }
 0x2a5   : > { %v1072_v18 = vld [vmem:[#allocation2 + $0x4] sm:$0xf] (!%p2272_p13)  ;;  %v2761_v22 = vld [vmem:[%s3368_s28] sm:$0xff] (!%p2272_p13)   ;;  %v2754_v23 = vld [vmem:[%s3353_s4 + $0x70] sm:$0xff] (!%p2272_p13)  }
 0x2a6   : > { %v1073_v19 = vld [vmem:[#allocation2 + $0x8] sm:$0xf] (!%p2272_p13)  ;;  %v1192_v24 = vld [vmem:[#allocation2] sm:$0x8] (!%p2272_p13)  ;;  %v2762_v25 = vld [vmem:[%s3368_s28 + $0x8] sm:$0xff] (!%p2272_p13)   ;;  %2561 = vmatpush3.bf16.msra.mxu0 (!%p2272_p13), %v2761_v22 }
 0x2a7   : > { %2455 = vmatpush3.bf16.msra.mxu1 (!%p2272_p13), %v2745_v10  ;;  %v2274_v21 = vcombine.low (!%p2272_p13), %v1072_v18, %v1073_v19  ;;  %v2760_v26 = vld [vmem:[#allocation2 + $0x8] ss:$0 sps:$4 sm:$0x77] (!%p2272_p13)   ;;  %2562 = vmatprep.subr.bf16.mxu0 (!%p2272_p13), %v3039_v9  ;;  %v2755_v27 = vld [vmem:[%s3353_s4 + $0x30] sm:$0xff] (!%p2272_p13)   ;;  %v2283_v29 = vcombine.low (!%p2272_p13), %v1192_v24, %v1072_v18  ;;  %v2765_v35 = vld [vmem:[%s3368_s28 + $0x20] sm:$0xff] (!%p2272_p13)  }
 0x2a8   : > { %2456 = vmatprep.subr.bf16.mxu1 (!%p2272_p13), %v2746_v11  ;;  %v2756_v28 = vld [vmem:[%s3353_s4 + $0x78] sm:$0xff] (!%p2272_p13)   ;;  %v2763_v30 = vld [vmem:[%s3368_s28 + $0x10] sm:$0xff] (!%p2272_p13)   ;;  %v1242_v33 = vrot.slane (!%p2272_p13), %v2760_v26, 3  ;;  %v2766_v37 = vld [vmem:[%s3368_s28 + $0x28] sm:$0xff] (!%p2272_p13)  }
 0x2a9   : > { %1376 = vmatprep.mubr.bf16.mxu1 %v2274_v21  ;;  %v2757_v31 = vld [vmem:[%s3353_s4 + $0x38] sm:$0xff]   ;;  %v1241_v32 = vrot.slane %v2283_v29, 3  ;;  %v2767_v38 = vld [vmem:[%s3368_s28 + $0x30] sm:$0xff]   ;;  %v2769_v40 = vld [vmem:[%s3361_s7 + $0x40] sm:$0xff]  }
 0x2aa   : > { %2563 = vmatpush3.bf16.msra.mxu0 %v2762_v25  ;;  %v2764_v34 = vld [vmem:[%s3368_s28 + $0x18] sm:$0xff]   ;;  %v2770_v41 = vld [vmem:[%s3361_s7] sm:$0xff]   ;;  %v2771_v42 = vld [vmem:[%s3361_s7 + $0x48] sm:$0xff]  }
 0x2ab   : > { %2457 = vmatpush3.bf16.msra.mxu1 %v2747_v12  ;;  %2564 = vmatprep.subr.bf16.mxu0 %v3039_v9  ;;  %v1243_v36 = vsel %vm1240_vm3, %v1241_v32, %v1242_v33  ;;  %v2768_v39 = vld [vmem:[%s3368_s28 + $0x38] sm:$0xff]   ;;  %v2772_v43 = vld [vmem:[%s3361_s7 + $0x8] sm:$0xff]   ;;  %v2773_v44 = vld [vmem:[%s3361_s7 + $0x50] sm:$0xff]  }
 0x2ac   : > { %2458 = vmatprep.subr.bf16.mxu1 %v2748_v13  ;;  %v2774_v45 = vld [vmem:[%s3361_s7 + $0x10] sm:$0xff]   ;;  %v2775_v46 = vld [vmem:[%s3361_s7 + $0x58] sm:$0xff]   ;;  %v2777_v48 = vld [vmem:[%s3361_s7 + $0x60] sm:$0xff]  }
 0x2ad   : > { %v2776_v47 = vld [vmem:[%s3361_s7 + $0x18] sm:$0xff]   ;;  %v2778_v49 = vld [vmem:[%s3361_s7 + $0x20] sm:$0xff]   ;;  %v2779_v50 = vld [vmem:[%s3361_s7 + $0x68] sm:$0xff]  }
 0x2ae   : > { %2565 = vmatpush3.bf16.msra.mxu0 %v2763_v30  ;;  %v2780_v51 = vld [vmem:[%s3361_s7 + $0x28] sm:$0xff]   ;;  %v2781_v52 = vld [vmem:[%s3361_s7 + $0x70] sm:$0xff]   ;;  %v2783_v54 = vld [vmem:[%s3361_s7 + $0x78] sm:$0xff]  }
 0x2af   : > { %2459 = vmatpush3.bf16.msra.mxu1 %v2749_v14  ;;  %2566 = vmatprep.subr.bf16.mxu0 %v3039_v9  ;;  %v2782_v53 = vld [vmem:[%s3361_s7 + $0x30] sm:$0xff]   ;;  %v2784_v55 = vld [vmem:[%s3361_s7 + $0x38] sm:$0xff]  }
 0x2b0   : > { %2460 = vmatprep.subr.bf16.mxu1 %v2750_v15  ;;  %v2285_v57 = vld [vmem:[%s3387_s5] ss:$0 sm:$0xff]  ;;  %v1397_v5 = vld [vmem:[#allocation2] sm:$0x8] }
 0x2b1   : > { %v2308_v19 = vld [vmem:[%s3392_s9] ss:$0 sm:$0xff] }
 0x2b2   : > { %2567 = vmatpush3.bf16.msra.mxu0 %v2764_v34 }
 0x2b3   : > { %2461 = vmatpush3.bf16.msra.mxu1 %v2751_v16  ;;  %2568 = vmatprep.subr.bf16.mxu0 %v3039_v9 }
 0x2b4   : > { %2462 = vmatprep.subr.bf16.mxu1 %v2752_v17 }
 0x2b6   : > { %2569 = vmatpush3.bf16.msra.mxu0 %v2765_v35 }
 0x2b7   : > { %2463 = vmatpush3.bf16.msra.mxu1 %v2753_v20  ;;  %2570 = vmatprep.subr.bf16.mxu0 %v3039_v9 }
 0x2b8   : > { %2464 = vmatprep.subr.bf16.mxu1 %v2754_v23  ;;  %v2273_v23 = vld [vmem:[%s3402_s21] ss:$0 sm:$0xff] }
 0x2ba   : > { %2571 = vmatpush3.bf16.msra.mxu0 %v2766_v37 }
 0x2bb   : > { %2465 = vmatpush3.bf16.msra.mxu1 %v2755_v27  ;;  %2572 = vmatprep.subr.bf16.mxu0 %v3039_v9 }
 0x2bc   : > { %2466 = vmatprep.subr.bf16.mxu1 %v2756_v28 }
 0x2be   : > { %2573 = vmatpush3.bf16.msra.mxu0 %v2767_v38 }
 0x2bf   : > { %2467 = vmatpush3.bf16.msra.mxu1 %v2757_v31  ;;  %2574 = vmatprep.subr.bf16.mxu0 %v3039_v9 }
 0x2c2   : > { %1377 = vmatmul.mubr.bf16.vlgmr.msra.gmra.mrb[0].mxu1 %v1243_v36  ;;  %2575 = vmatpush3.bf16.msra.mxu0 %v2768_v39 }
 0x2c3   : > { %2474 = vmatprep.subr.bf16.mxu0 %v2769_v40 }
 0x2c5   : > { %2577 = vmatmul.mubr.bf16.vlgmr.msra.gmra.mrb[0].mxu0 %v2274_v21 }
 0x2c6   : > { %2475 = vmatpush3.bf16.msra.mxu0 %v2770_v41 }
 0x2c7   : > { %2476 = vmatprep.subr.bf16.mxu0 %v2771_v42 }
 0x2ca   : > { %2477 = vmatpush3.bf16.msra.mxu0 %v2772_v43 }
 0x2cb   : > { %2478 = vmatprep.subr.bf16.mxu0 %v2773_v44 }
 0x2ce   : > { %2479 = vmatpush3.bf16.msra.mxu0 %v2774_v45 }
 0x2cf   : > { %2480 = vmatprep.subr.bf16.mxu0 %v2775_v46 }
 0x2d2   : > { %2481 = vmatpush3.bf16.msra.mxu0 %v2776_v47 }
 0x2d3   : > { %2482 = vmatprep.subr.bf16.mxu0 %v2777_v48 }
 0x2d6   : > { %2483 = vmatpush3.bf16.msra.mxu0 %v2778_v49 }
 0x2d7   : > { %2484 = vmatprep.subr.bf16.mxu0 %v2779_v50 }
 0x2da   : > { %2485 = vmatpush3.bf16.msra.mxu0 %v2780_v51 }
 0x2db   : > { %2486 = vmatprep.subr.bf16.mxu0 %v2781_v52 }
 0x2de   : > { %2487 = vmatpush3.bf16.msra.mxu0 %v2782_v53 }
 0x2df   : > { %2488 = vmatprep.subr.bf16.mxu0 %v2783_v54 }
 0x2e2   : > { %2489 = vmatpush3.bf16.msra.mxu0 %v2784_v55 }
 0x395   : > { %v2468_v56 = vpop.f32.mrb[0].mxu1 }
 0x396   : > { %v2469_v58 = vpop.f32.mrb[1].mxu1 }
 0x397   : > { %v2470_v59 = vadd.f32 %v2469_v58, %v2468_v56  ;;  %v2471_v60 = vpop.f32.mrb[2].mxu1 }
 0x398   : > { %v2472_v61 = vpop.f32.mrb[3].mxu1  ;;  %v1185_v7 = vpop.f32.mrb[0].mxu0 }
 0x399   : > { %v1379_v62 = vadd.f32 %v2470_v59, %v2285_v57  ;;  %v2473_v63 = vadd.f32 %v2472_v61, %v2471_v60  ;;  %v2578_v9 = vpop.f32.mrb[1].mxu0  ;;  %v1186_v27 = vadd.f32 %v2273_v23, %v1185_v7 }
 0x39a   : > { %v1188_v11 = vpop.f32.mrb[2].mxu0 }
 0x39b   : > { %v1385_v0 = vmax.f32 %v1379_v62, 0.0  ;;  %v1382_v1 = vadd.f32 %v2473_v63, %v2285_v57  ;;  %v2579_v15 = vpop.f32.mrb[3].mxu0  ;;  %v1189_v30 = vadd.f32 %v2273_v23, %v1188_v11 }
 0x39d   : > { %v2384_v2 = vpack.c.bf16 %v1385_v0, %v1385_v0  ;;  %v1386_v3 = vmax.f32 %v1382_v1, 0.0 }
 0x39f   : > { %1395 = vst [vmem:[#allocation2 + $0x4] sm:$0xf] %v2384_v2  ;;  %v2385_v4 = vpack.c.bf16 %v1386_v3, %v1386_v3 }
 0x3a1   : > { %1396 = vst [vmem:[#allocation2 + $0x8] sm:$0xf] %v2385_v4 }
 0x3a6   : > { %v1398_v6 = vld [vmem:[#allocation2 + $0x4] sm:$0xf] }
 0x3a7   : > { %v2305_v8 = vcombine.low %v1397_v5, %v1398_v6 }
 0x3a8   : > { %v1400_v10 = vld [vmem:[#allocation2 + $0x8] sm:$0xf] }
 0x3a9   : > { %v2307_v12 = vcombine.low %v1398_v6, %v1400_v10  ;;  %v2787_v13 = vld [vmem:[#allocation2 + $0x8] ss:$0 sps:$4 sm:$0x77]   ;;  %v1452_v14 = vrot.slane %v2305_v8, 3 }
 0x3aa   : > { %v1453_v16 = vrot.slane %v2787_v13, 3 }
 0x3ab   : > { %1587 = vmatprep.mubr.bf16.mxu0 %v2307_v12 }
 0x3ac   : > { %v1454_v17 = vsel %vm1240_vm3, %v1452_v14, %v1453_v16 }
 0x3ad   : > { %1588 = vmatmul.mubr.bf16.vlgmr.msra.gmra.mrb[4].mxu0 %v1454_v17 }
 0x480   : > { %v2490_v18 = vpop.f32.mrb[4].mxu0 }
 0x481   : > { %v2491_v20 = vpop.f32.mrb[5].mxu0 }
 0x482   : > { %v2492_v21 = vadd.f32 %v2491_v20, %v2490_v18  ;;  %v2493_v22 = vpop.f32.mrb[6].mxu0 }
 0x483   : > { %v2494_v24 = vpop.f32.mrb[7].mxu0 }
 0x484   : > { %v1590_v25 = vadd.f32 %v2492_v21, %v2308_v19  ;;  %v2495_v26 = vadd.f32 %v2494_v24, %v2493_v22 }
 0x486   : > { %v1596_v28 = vmax.f32 %v1590_v25, 0.0  ;;  %v1593_v29 = vadd.f32 %v2495_v26, %v2308_v19 }
 0x488   : > { %v1598_v31 = vadd.f32 %v1596_v28, %v1186_v27  ;;  %v1597_v32 = vmax.f32 %v1593_v29, 0.0 }
 0x48a   : > { %v1600_v33 = vmax.f32 %v1598_v31, 0.0  ;;  %v1599_v34 = vadd.f32 %v1597_v32, %v1189_v30 }
 0x48c   : > { %v2386_v35 = vpack.c.bf16 %v1600_v33, %v1600_v33  ;;  %v1601_v36 = vmax.f32 %v1599_v34, 0.0 }
 0x48e   : > { %1610 = vst [vmem:[#allocation2 + $0x4] sm:$0xf] %v2386_v35  ;;  %v2387_v37 = vpack.c.bf16 %v1601_v36, %v1601_v36 }
 0x490   : > { %1611 = vst [vmem:[#allocation2 + $0x8] sm:$0xf] %v2387_v37 }
 0x491 PF: > { %p2328_p1 = scmp.ne.s32.totalorder %s3012_s15, 2 }
 0x492   : > { %v2788_v38 = vld [vmem:[%s3353_s4 + $0x40] sm:$0xff] (!%p2328_p1)   ;;  %v2790_v40 = vld [vmem:[%s3353_s4 + $0x48] sm:$0xff] (!%p2328_p1)   ;;  %v2792_v42 = vld [vmem:[%s3353_s4 + $0x50] sm:$0xff] (!%p2328_p1)   ;;  %vm1673_vm4 = vcmask (!%p2328_p1), 1045504  }
 0x493   : > { %1615 = sbr.rel (%p2328_p1) target bundleno = 1664 (0x680), region = 72  ;;  %v2789_v39 = vld [vmem:[%s3353_s4] sm:$0xff] (!%p2328_p1)   ;;  %2496 = vmatprep.subr.bf16.mxu0 (!%p2328_p1), %v2788_v38  ;;  %v2791_v41 = vld [vmem:[%s3353_s4 + $0x8] sm:$0xff] (!%p2328_p1)   ;;  %v2793_v43 = vld [vmem:[%s3353_s4 + $0x10] sm:$0xff] (!%p2328_p1)  }
 0x494   : > { %2497 = vmatpush3.bf16.msra.mxu0 (!%p2328_p1), %v2789_v39  ;;  %v2794_v44 = vld [vmem:[%s3353_s4 + $0x58] sm:$0xff] (!%p2328_p1)   ;;  %v2796_v46 = vld [vmem:[%s3353_s4 + $0x60] sm:$0xff] (!%p2328_p1)   ;;  %v2798_v48 = vld [vmem:[%s3353_s4 + $0x68] sm:$0xff] (!%p2328_p1)  }
 0x495   : > { %2498 = vmatprep.subr.bf16.mxu0 (!%p2328_p1), %v2790_v40  ;;  %v2795_v45 = vld [vmem:[%s3353_s4 + $0x18] sm:$0xff] (!%p2328_p1)   ;;  %v2797_v47 = vld [vmem:[%s3353_s4 + $0x20] sm:$0xff] (!%p2328_p1)   ;;  %v1620_v51 = vld [vmem:[#allocation2] sm:$0xc] (!%p2328_p1) }
 0x496   : > { %v3527_v49 = vld [vmem:[#allocation2 + $0x4] sm:$0xf] (!%p2328_p1)  ;;  %v2799_v52 = vld [vmem:[%s3353_s4 + $0x28] sm:$0xff] (!%p2328_p1)   ;;  %v2807_v56 = vld [vmem:[%s3361_s7 + $0x40] sm:$0xff] (!%p2328_p1)  }
 0x497   : > { %v3529_v50 = vld [vmem:[#allocation2 + $0x8] sm:$0xf] (!%p2328_p1)  ;;  %v2329_v54 = vcombine.low (!%p2328_p1), %v1620_v51, %v3527_v49  ;;  %v2800_v57 = vld [vmem:[%s3353_s4 + $0x70] sm:$0xff] (!%p2328_p1)   ;;  %v2808_v59 = vld [vmem:[%s3361_s7] sm:$0xff] (!%p2328_p1)   ;;  %2518 = vmatprep.subr.bf16.mxu1 (!%p2328_p1), %v2807_v56 }
 0x498   : > { %2499 = vmatpush3.bf16.msra.mxu0 (!%p2328_p1), %v2791_v41  ;;  %v2331_v53 = vcombine.low (!%p2328_p1), %v3527_v49, %v3529_v50  ;;  %v2806_v55 = vld [vmem:[#allocation2 + $0x8] ss:$0 sps:$4 sm:$0x33] (!%p2328_p1)   ;;  %v2809_v60 = vld [vmem:[%s3361_s7 + $0x48] sm:$0xff] (!%p2328_p1)   ;;  %v2801_v61 = vld [vmem:[%s3353_s4 + $0x30] sm:$0xff] (!%p2328_p1)   ;;  %2519 = vmatpush3.bf16.msra.mxu1 (!%p2328_p1), %v2808_v59 }
 0x499   : > { %2500 = vmatprep.subr.bf16.mxu0 (!%p2328_p1), %v2792_v42  ;;  %v1674_v58 = vrot.slane (!%p2328_p1), %v2329_v54, 2  ;;  %v1675_v62 = vrot.slane (!%p2328_p1), %v2806_v55, 2  ;;  %v2810_v63 = vld [vmem:[%s3361_s7 + $0x8] sm:$0xff] (!%p2328_p1)   ;;  %v2802_v0 = vld [vmem:[%s3353_s4 + $0x78] sm:$0xff] (!%p2328_p1)   ;;  %2520 = vmatprep.subr.bf16.mxu1 (!%p2328_p1), %v2809_v60  ;;  %v2811_v3 = vld [vmem:[%s3361_s7 + $0x50] sm:$0xff] (!%p2328_p1)  }
 0x49a   : > { %1809 = vmatprep.mubr.bf16.mxu0 %v2331_v53  ;;  %v2803_v1 = vld [vmem:[%s3353_s4 + $0x38] sm:$0xff]   ;;  %v2812_v4 = vld [vmem:[%s3361_s7 + $0x10] sm:$0xff]   ;;  %v2815_v7 = vld [vmem:[%s3361_s7 + $0x60] sm:$0xff]  }
 0x49b   : > { %v1676_v2 = vsel %vm1673_vm4, %v1674_v58, %v1675_v62  ;;  %v2813_v5 = vld [vmem:[%s3361_s7 + $0x58] sm:$0xff]   ;;  %v2816_v8 = vld [vmem:[%s3361_s7 + $0x20] sm:$0xff]   ;;  %v2817_v9 = vld [vmem:[%s3361_s7 + $0x68] sm:$0xff]  }
 0x49c   : > { %2501 = vmatpush3.bf16.msra.mxu0 %v2793_v43  ;;  %2521 = vmatpush3.bf16.msra.mxu1 %v2810_v63  ;;  %v2814_v6 = vld [vmem:[%s3361_s7 + $0x18] sm:$0xff]   ;;  %v2818_v10 = vld [vmem:[%s3361_s7 + $0x28] sm:$0xff]   ;;  %v2819_v11 = vld [vmem:[%s3361_s7 + $0x70] sm:$0xff]   ;;  %v1618_v43 = vunpack.c.l.bf16 %v3527_v49 }
 0x49d   : > { %2502 = vmatprep.subr.bf16.mxu0 %v2794_v44  ;;  %2522 = vmatprep.subr.bf16.mxu1 %v2811_v3  ;;  %v2820_v12 = vld [vmem:[%s3361_s7 + $0x30] sm:$0xff]   ;;  %v2821_v13 = vld [vmem:[%s3361_s7 + $0x78] sm:$0xff]  }
 0x49e   : > { %v2822_v14 = vld [vmem:[%s3361_s7 + $0x38] sm:$0xff]   ;;  %v2332_v16 = vld [vmem:[%s3387_s5] ss:$0 sm:$0xff]  ;;  %v1830_v28 = vld [vmem:[#allocation2] sm:$0xc] }
 0x49f   : > { %v2355_v38 = vld [vmem:[%s3392_s9] ss:$0 sm:$0xff] }
 0x4a0   : > { %2503 = vmatpush3.bf16.msra.mxu0 %v2795_v45  ;;  %2523 = vmatpush3.bf16.msra.mxu1 %v2812_v4 }
 0x4a1   : > { %2504 = vmatprep.subr.bf16.mxu0 %v2796_v46  ;;  %2524 = vmatprep.subr.bf16.mxu1 %v2813_v5  ;;  %v1619_v46 = vunpack.c.l.bf16 %v3529_v50 }
 0x4a4   : > { %2505 = vmatpush3.bf16.msra.mxu0 %v2797_v47  ;;  %2525 = vmatpush3.bf16.msra.mxu1 %v2814_v6 }
 0x4a5   : > { %2506 = vmatprep.subr.bf16.mxu0 %v2798_v48  ;;  %2526 = vmatprep.subr.bf16.mxu1 %v2815_v7 }
 0x4a8   : > { %2507 = vmatpush3.bf16.msra.mxu0 %v2799_v52  ;;  %2527 = vmatpush3.bf16.msra.mxu1 %v2816_v8 }
 0x4a9   : > { %2508 = vmatprep.subr.bf16.mxu0 %v2800_v57  ;;  %2528 = vmatprep.subr.bf16.mxu1 %v2817_v9 }
 0x4ac   : > { %2509 = vmatpush3.bf16.msra.mxu0 %v2801_v61  ;;  %2529 = vmatpush3.bf16.msra.mxu1 %v2818_v10 }
 0x4ad   : > { %2510 = vmatprep.subr.bf16.mxu0 %v2802_v0  ;;  %2530 = vmatprep.subr.bf16.mxu1 %v2819_v11 }
 0x4b0   : > { %2511 = vmatpush3.bf16.msra.mxu0 %v2803_v1  ;;  %2531 = vmatpush3.bf16.msra.mxu1 %v2820_v12 }
 0x4b1   : > { %2532 = vmatprep.subr.bf16.mxu1 %v2821_v13 }
 0x4b3   : > { %1810 = vmatmul.mubr.bf16.vlgmr.msra.gmra.mrb[0].mxu0 %v1676_v2 }
 0x4b4   : > { %2533 = vmatpush3.bf16.msra.mxu1 %v2822_v14 }
 0x586   : > { %v2512_v15 = vpop.f32.mrb[0].mxu0 }
 0x587   : > { %v2513_v17 = vpop.f32.mrb[1].mxu0 }
 0x588   : > { %v2514_v18 = vadd.f32 %v2513_v17, %v2512_v15  ;;  %v2515_v19 = vpop.f32.mrb[2].mxu0 }
 0x589   : > { %v2516_v20 = vpop.f32.mrb[3].mxu0 }
 0x58a   : > { %v1812_v21 = vadd.f32 %v2514_v18, %v2332_v16  ;;  %v2517_v22 = vadd.f32 %v2516_v20, %v2515_v19 }
 0x58c   : > { %v1818_v23 = vmax.f32 %v1812_v21, 0.0  ;;  %v1815_v24 = vadd.f32 %v2517_v22, %v2332_v16 }
 0x58e   : > { %v2388_v25 = vpack.c.bf16 %v1818_v23, %v1818_v23  ;;  %v1819_v26 = vmax.f32 %v1815_v24, 0.0 }
 0x590   : > { %1828 = vst [vmem:[#allocation2 + $0x4] sm:$0xf] %v2388_v25  ;;  %v2389_v27 = vpack.c.bf16 %v1819_v26, %v1819_v26 }
 0x592   : > { %1829 = vst [vmem:[#allocation2 + $0x8] sm:$0xf] %v2389_v27 }
 0x597   : > { %v1831_v29 = vld [vmem:[#allocation2 + $0x4] sm:$0xf] }
 0x598   : > { %v2352_v30 = vcombine.low %v1830_v28, %v1831_v29 }
 0x599   : > { %v1833_v31 = vld [vmem:[#allocation2 + $0x8] sm:$0xf] }
 0x59a   : > { %v2354_v32 = vcombine.low %v1831_v29, %v1833_v31  ;;  %v1885_v33 = vrot.slane %v2352_v30, 2  ;;  %v2825_v34 = vld [vmem:[#allocation2 + $0x8] ss:$0 sps:$4 sm:$0x33]  }
 0x59b   : > { %v1886_v35 = vrot.slane %v2825_v34, 2 }
 0x59c   : > { %2020 = vmatprep.mubr.bf16.mxu1 %v2354_v32 }
 0x59d   : > { %v1887_v36 = vsel %vm1673_vm4, %v1885_v33, %v1886_v35 }
 0x59e   : > { %2021 = vmatmul.mubr.bf16.vlgmr.msra.gmra.mrb[0].mxu1 %v1887_v36 }
 0x671   : > { %v2534_v37 = vpop.f32.mrb[0].mxu1 }
 0x672   : > { %v2535_v39 = vpop.f32.mrb[1].mxu1 }
 0x673   : > { %v2536_v40 = vadd.f32 %v2535_v39, %v2534_v37  ;;  %v2537_v41 = vpop.f32.mrb[2].mxu1 }
 0x674   : > { %v2538_v42 = vpop.f32.mrb[3].mxu1 }
 0x675   : > { %v2023_v44 = vadd.f32 %v2536_v40, %v2355_v38  ;;  %v2539_v45 = vadd.f32 %v2538_v42, %v2537_v41 }
 0x677   : > { %v2029_v47 = vmax.f32 %v2023_v44, 0.0  ;;  %v2026_v48 = vadd.f32 %v2539_v45, %v2355_v38 }
 0x679   : > { %v2031_v51 = vadd.f32 %v2029_v47, %v1618_v43  ;;  %v2030_v52 = vmax.f32 %v2026_v48, 0.0 }
 0x67b   : > { %v2033_v53 = vmax.f32 %v2031_v51, 0.0  ;;  %v2032_v54 = vadd.f32 %v2030_v52, %v1619_v46 }
 0x67d   : > { %2035 = vst [vmem:[%s3397_s17] sm:$0xff] %v2033_v53  ;;  %v2034_v55 = vmax.f32 %v2032_v54, 0.0 }
 0x67f   : > { %2036 = vst [vmem:[%s3397_s17 + $0x8] sm:$0xff] %v2034_v55 }
 0x680 PF: > { %s30_s19 = sadd.s32 1, %s3028_s19   ;;  %s3655_s2 = sld [smem:[#allocation20_spill]] }
 0x681   : > { %p27_p6 = scmp.ge.s32.totalorder %s30_s19, 8   ;;  %s3656_s15 = sld [smem:[#allocation16_spill]] }
 0x682   : > { %s3657_s16 = sld [smem:[#allocation17_spill]]  ;;  %s3658_s17 = sld [smem:[#allocation18_spill]] }
 0x683   : > { %s3659_s18 = sld [smem:[#allocation19_spill]]  ;;  %s3660_s10 = smov %s2992_s0 }
 0x684   : > { %s3661_s0 = smov %s2996_s11  ;;  %s3662_s11 = smov %s3292_s22 }
 0x685   : > { %s3663_s12 = smov %s3004_s13  ;;  %s3664_s13 = smov %s3008_s14 }
 0x686   : > { %s3665_s14 = smov %s3655_s2  ;;  %29 = sbr.rel (!%p27_p6) target bundleno = 26 (0x1a), region = 136 }
 0x68d   :  { %2058 = vsyncpa [#allocation6], 1 }
 0x68e   :  { %2060 = vsyncpa [#allocation6 + $0x1], 1 }
 0x68f   :  { %2061 = vsyncpa [#allocation8], 1 }
 0x690   :  { %2063 = vsyncpa [#allocation8 + $0x1], 1 }

</bundles_post_ra>
